<compile_context>
chip_gen: v6e
topology: v6e:2x2x1
jax: 0.10.0
libtpu: 0.0.40
codegen_flags: <defaults>
</compile_context>

<pallas_src>
import jax
import jax.numpy as jnp
from jax.experimental import pallas as pl
from jax.experimental.pallas import tpu as pltpu

# Small, TPU-friendly hyperparameters consistent with the module's structure
# (module defaults d=100, h=300, r=20 -> lane-aligned and scaled down here).
D = 128       # per-arg feature dim and output dim (lane-aligned)
R = 4         # number of concatenated inputs  -> d*r = 512 input features
H = 128       # hidden dim (lane-aligned)
M = 2048      # total rows: all UpdateEnc invocations batched into one call
TILE_M = 512  # row tile: sublane-aligned; sized for VMEM/pipeline budget, not the MXU


def _make_update_enc_kernel(num_inputs):
    """Kernel over refs = (x_0..x_{R-1}, w1, b1, w2, b2, o_ref)."""

    def kernel(*refs):
        x_refs = refs[:num_inputs]
        w1_ref, b1_ref, w2_ref, b2_ref, o_ref = refs[num_inputs:]

        # Layer 1:  sum_r x_r @ W1[r]   (== cat(x_r) @ W1_flat, no concat buffer).
        # x_refs are already bf16 (producer dtype); f32 MXU accumulation.
        acc = jnp.dot(x_refs[0][...], w1_ref[0],
                      preferred_element_type=jnp.float32)
        for r in range(1, num_inputs):
            acc += jnp.dot(x_refs[r][...], w1_ref[r],
                           preferred_element_type=jnp.float32)

        # Bias + ReLU in f32 (v5e has no bf16 VPU; elementwise work is tiny).
        hid = jnp.maximum(acc + b1_ref[...], 0.0)

        # Layer 2: (tile_m, H) @ (H, D) + (1, D)
        out = jnp.dot(hid.astype(jnp.bfloat16), w2_ref[...],
                      preferred_element_type=jnp.float32)
        o_ref[...] = (out + b2_ref[...]).astype(o_ref.dtype)

    return kernel


def update_enc_forward(args, w1, b1, w2, b2, *, tile_m=TILE_M,
                       out_dtype=jnp.bfloat16):
    """args: sequence of R bf16 arrays of shape (M, D). Returns (M, D) `out_dtype`.

    w1: (R, D, H) bf16 stacked row-slices of the (D*R, H) layer-1 weight.
    b1: (1, H) f32,  w2: (H, D) bf16,  b2: (1, D) f32.
    """
    r = len(args)
    m, d = args[0].shape
    h = w1.shape[-1]
    out_d = w2.shape[-1]

    tile_m = min(tile_m, m)
    assert m % tile_m == 0, "pad the batched rows to a multiple of tile_m"

    grid = (m // tile_m,)
    x_spec = pl.BlockSpec((tile_m, d), lambda i: (i, 0))
    in_specs = [x_spec] * r + [
        pl.BlockSpec((r, d, h), lambda i: (0, 0, 0)),   # w1: VMEM-resident
        pl.BlockSpec((1, h), lambda i: (0, 0)),         # b1
        pl.BlockSpec((h, out_d), lambda i: (0, 0)),     # w2: VMEM-resident
        pl.BlockSpec((1, out_d), lambda i: (0, 0)),     # b2
    ]

    return pl.pallas_call(
        _make_update_enc_kernel(r),
        out_shape=jax.ShapeDtypeStruct((m, out_d), out_dtype),
        grid=grid,
        in_specs=in_specs,
        out_specs=pl.BlockSpec((tile_m, out_d), lambda i: (i, 0)),
        compiler_params=pltpu.CompilerParams(
            # Batch axis is embarrassingly parallel -> v7x shards it across
            # both TensorCores; no vmem_limit override (needs < 2 MiB).
            dimension_semantics=("parallel",),
        ),
    )(*args, w1, b1, w2, b2)


def init_params(key, r, d, h, out_d):
    """PyTorch-style uniform init. Weights stored bf16 (pre-transposed), biases f32."""
    k1, k2, k3, k4 = jax.random.split(key, 4)
    bound1 = float(1.0 / (d * r) ** 0.5)
    bound2 = float(1.0 / h ** 0.5)
    # Layer-1 weight stored as (R, D, H): row-slices of the (D*R, H) matrix.
    w1 = jax.random.uniform(k1, (r, d, h), jnp.float32, -bound1, bound1).astype(jnp.bfloat16)
    b1 = jax.random.uniform(k2, (1, h), jnp.float32, -bound1, bound1)
    w2 = jax.random.uniform(k3, (h, out_d), jnp.float32, -bound2, bound2).astype(jnp.bfloat16)
    b2 = jax.random.uniform(k4, (1, out_d), jnp.float32, -bound2, bound2)
    return w1, b1, w2, b2


if __name__ == "__main__":
    key = jax.random.PRNGKey(0)
    key_p, key_x = jax.random.split(key)

    w1, b1, w2, b2 = init_params(key_p, R, D, H, D)
    # R input tensors of shape (M, D): the variadic *args of forward(), with all
    # per-node invocations stacked along the row axis.  Produced directly in
    # bf16 (the producer's dtype) -- no separate wrapper-side cast op.
    x_keys = jax.random.split(key_x, R)
    xs = tuple(jax.random.normal(k, (M, D), jnp.bfloat16) for k in x_keys)

    out = jax.block_until_ready(update_enc_forward(xs, w1, b1, w2, b2))

    # Pure-JAX reference with the same bf16-dot / f32-accumulate numerics.
    feat = jnp.concatenate(xs, axis=1)                            # (M, D*R) bf16
    w1_flat = w1.reshape(R * D, H)                                # (D*R, H)
    hid = jnp.maximum(
        jnp.dot(feat, w1_flat, preferred_element_type=jnp.float32) + b1, 0.0)
    ref = jnp.dot(hid.astype(jnp.bfloat16), w2,
                  preferred_element_type=jnp.float32) + b2

    assert out.shape == (M, D)
    err = float(jnp.max(jnp.abs(out.astype(jnp.float32) - ref)))
    assert jnp.allclose(out.astype(jnp.float32), ref, atol=2e-2, rtol=2e-2), err

    print("KERNEL_OK")
</pallas_src>

<mosaic_0001>
module attributes {stable_mosaic.version = 11 : i64} {
  func.func @kernel(%arg0: i32, %arg1: memref<512x128xbf16, #tpu.memory_space<vmem>>, %arg2: memref<512x128xbf16, #tpu.memory_space<vmem>>, %arg3: memref<512x128xbf16, #tpu.memory_space<vmem>>, %arg4: memref<512x128xbf16, #tpu.memory_space<vmem>>, %arg5: memref<4x128x128xbf16, #tpu.memory_space<vmem>>, %arg6: memref<1x128xf32, #tpu.memory_space<vmem>>, %arg7: memref<128x128xbf16, #tpu.memory_space<vmem>>, %arg8: memref<1x128xf32, #tpu.memory_space<vmem>>, %arg9: memref<512x128xbf16, #tpu.memory_space<vmem>>) attributes {dimension_semantics = [#tpu.dimension_semantics<parallel>], iteration_bounds = array<i64: 4>, scalar_prefetch = 0 : i64, scratch_operands = 0 : i64, tpu.core_type = #tpu.core_type<tc>, window_params = [{transform_indices = @transform_0, window_bounds = array<i64: 512, 128>}, {transform_indices = @transform_1, window_bounds = array<i64: 512, 128>}, {transform_indices = @transform_2, window_bounds = array<i64: 512, 128>}, {transform_indices = @transform_3, window_bounds = array<i64: 512, 128>}, {pipeline_mode = #tpu.pipeline_mode<synchronous>, transform_indices = @transform_4, window_bounds = array<i64: 4, 128, 128>}, {pipeline_mode = #tpu.pipeline_mode<synchronous>, transform_indices = @transform_5, window_bounds = array<i64: 1, 128>}, {pipeline_mode = #tpu.pipeline_mode<synchronous>, transform_indices = @transform_6, window_bounds = array<i64: 128, 128>}, {pipeline_mode = #tpu.pipeline_mode<synchronous>, transform_indices = @transform_7, window_bounds = array<i64: 1, 128>}, {transform_indices = @transform_8, window_bounds = array<i64: 512, 128>}]} {
    %c0 = arith.constant 0 : index
    %c0_0 = arith.constant 0 : index
    %0 = vector.load %arg1[%c0, %c0_0] : memref<512x128xbf16, #tpu.memory_space<vmem>>, vector<512x128xbf16>
    %c0_1 = arith.constant 0 : index
    %c0_2 = arith.constant 0 : index
    %c0_3 = arith.constant 0 : index
    %1 = vector.load %arg5[%c0_1, %c0_2, %c0_3] : memref<4x128x128xbf16, #tpu.memory_space<vmem>>, vector<1x128x128xbf16>
    %2 = vector.shape_cast %1 : vector<1x128x128xbf16> to vector<128x128xbf16>
    %cst = arith.constant dense<0.000000e+00> : vector<512x128xf32>
    %3 = tpu.matmul %0, %2, %cst {dimension_numbers = #tpu.dot_dimension_numbers<[1], [0], [0], [1], [0, 0, 1, 1], [], []>} : vector<512x128xbf16>, vector<128x128xbf16>, vector<512x128xf32> -> vector<512x128xf32>
    %c0_4 = arith.constant 0 : index
    %c0_5 = arith.constant 0 : index
    %4 = vector.load %arg2[%c0_4, %c0_5] : memref<512x128xbf16, #tpu.memory_space<vmem>>, vector<512x128xbf16>
    %c1 = arith.constant 1 : index
    %c0_6 = arith.constant 0 : index
    %c0_7 = arith.constant 0 : index
    %5 = vector.load %arg5[%c1, %c0_6, %c0_7] : memref<4x128x128xbf16, #tpu.memory_space<vmem>>, vector<1x128x128xbf16>
    %6 = vector.shape_cast %5 : vector<1x128x128xbf16> to vector<128x128xbf16>
    %cst_8 = arith.constant dense<0.000000e+00> : vector<512x128xf32>
    %7 = tpu.matmul %4, %6, %cst_8 {dimension_numbers = #tpu.dot_dimension_numbers<[1], [0], [0], [1], [0, 0, 1, 1], [], []>} : vector<512x128xbf16>, vector<128x128xbf16>, vector<512x128xf32> -> vector<512x128xf32>
    %8 = arith.addf %3, %7 : vector<512x128xf32>
    %c0_9 = arith.constant 0 : index
    %c0_10 = arith.constant 0 : index
    %9 = vector.load %arg3[%c0_9, %c0_10] : memref<512x128xbf16, #tpu.memory_space<vmem>>, vector<512x128xbf16>
    %c2 = arith.constant 2 : index
    %c0_11 = arith.constant 0 : index
    %c0_12 = arith.constant 0 : index
    %10 = vector.load %arg5[%c2, %c0_11, %c0_12] : memref<4x128x128xbf16, #tpu.memory_space<vmem>>, vector<1x128x128xbf16>
    %11 = vector.shape_cast %10 : vector<1x128x128xbf16> to vector<128x128xbf16>
    %cst_13 = arith.constant dense<0.000000e+00> : vector<512x128xf32>
    %12 = tpu.matmul %9, %11, %cst_13 {dimension_numbers = #tpu.dot_dimension_numbers<[1], [0], [0], [1], [0, 0, 1, 1], [], []>} : vector<512x128xbf16>, vector<128x128xbf16>, vector<512x128xf32> -> vector<512x128xf32>
    %13 = arith.addf %8, %12 : vector<512x128xf32>
    %c0_14 = arith.constant 0 : index
    %c0_15 = arith.constant 0 : index
    %14 = vector.load %arg4[%c0_14, %c0_15] : memref<512x128xbf16, #tpu.memory_space<vmem>>, vector<512x128xbf16>
    %c3 = arith.constant 3 : index
    %c0_16 = arith.constant 0 : index
    %c0_17 = arith.constant 0 : index
    %15 = vector.load %arg5[%c3, %c0_16, %c0_17] : memref<4x128x128xbf16, #tpu.memory_space<vmem>>, vector<1x128x128xbf16>
    %16 = vector.shape_cast %15 : vector<1x128x128xbf16> to vector<128x128xbf16>
    %cst_18 = arith.constant dense<0.000000e+00> : vector<512x128xf32>
    %17 = tpu.matmul %14, %16, %cst_18 {dimension_numbers = #tpu.dot_dimension_numbers<[1], [0], [0], [1], [0, 0, 1, 1], [], []>} : vector<512x128xbf16>, vector<128x128xbf16>, vector<512x128xf32> -> vector<512x128xf32>
    %18 = arith.addf %13, %17 : vector<512x128xf32>
    %c0_19 = arith.constant 0 : index
    %c0_20 = arith.constant 0 : index
    %19 = vector.load %arg6[%c0_19, %c0_20] : memref<1x128xf32, #tpu.memory_space<vmem>>, vector<1x128xf32>
    %20 = vector.broadcast %19 : vector<1x128xf32> to vector<512x128xf32>
    %21 = arith.addf %18, %20 : vector<512x128xf32>
    %cst_21 = arith.constant 0.000000e+00 : f32
    %22 = vector.broadcast %cst_21 : f32 to vector<512x128xf32>
    %23 = arith.maximumf %21, %22 : vector<512x128xf32>
    %24 = arith.truncf %23 : vector<512x128xf32> to vector<512x128xbf16>
    %c0_22 = arith.constant 0 : index
    %c0_23 = arith.constant 0 : index
    %25 = vector.load %arg7[%c0_22, %c0_23] : memref<128x128xbf16, #tpu.memory_space<vmem>>, vector<128x128xbf16>
    %cst_24 = arith.constant dense<0.000000e+00> : vector<512x128xf32>
    %26 = tpu.matmul %24, %25, %cst_24 {dimension_numbers = #tpu.dot_dimension_numbers<[1], [0], [0], [1], [0, 0, 1, 1], [], []>} : vector<512x128xbf16>, vector<128x128xbf16>, vector<512x128xf32> -> vector<512x128xf32>
    %c0_25 = arith.constant 0 : index
    %c0_26 = arith.constant 0 : index
    %27 = vector.load %arg8[%c0_25, %c0_26] : memref<1x128xf32, #tpu.memory_space<vmem>>, vector<1x128xf32>
    %28 = vector.broadcast %27 : vector<1x128xf32> to vector<512x128xf32>
    %29 = arith.addf %26, %28 : vector<512x128xf32>
    %30 = arith.truncf %29 : vector<512x128xf32> to vector<512x128xbf16>
    %c0_27 = arith.constant 0 : index
    %c0_28 = arith.constant 0 : index
    %31 = vector.load %arg9[%c0_27, %c0_28] : memref<512x128xbf16, #tpu.memory_space<vmem>>, vector<512x128xbf16>
    tpu.vector_store %arg9[%c0_27, %c0_28], %30 {strides = array<i32>} : memref<512x128xbf16, #tpu.memory_space<vmem>>, vector<512x128xbf16>,
    return
  }
  func.func @transform_0(%arg0: i32) -> (i32, i32) {
    %c0_i32 = arith.constant 0 : i32
    %c0_i32_0 = arith.constant 0 : i32
    return %arg0, %c0_i32 : i32, i32
  }
  func.func @transform_1(%arg0: i32) -> (i32, i32) {
    %c0_i32 = arith.constant 0 : i32
    %c0_i32_0 = arith.constant 0 : i32
    return %arg0, %c0_i32 : i32, i32
  }
  func.func @transform_2(%arg0: i32) -> (i32, i32) {
    %c0_i32 = arith.constant 0 : i32
    %c0_i32_0 = arith.constant 0 : i32
    return %arg0, %c0_i32 : i32, i32
  }
  func.func @transform_3(%arg0: i32) -> (i32, i32) {
    %c0_i32 = arith.constant 0 : i32
    %c0_i32_0 = arith.constant 0 : i32
    return %arg0, %c0_i32 : i32, i32
  }
  func.func @transform_4(%arg0: i32) -> (i32, i32, i32) {
    %c0_i32 = arith.constant 0 : i32
    %c0_i32_0 = arith.constant 0 : i32
    %c0_i32_1 = arith.constant 0 : i32
    %c0_i32_2 = arith.constant 0 : i32
    return %c0_i32, %c0_i32_0, %c0_i32_1 : i32, i32, i32
  }
  func.func @transform_5(%arg0: i32) -> (i32, i32) {
    %c0_i32 = arith.constant 0 : i32
    %c0_i32_0 = arith.constant 0 : i32
    %c0_i32_1 = arith.constant 0 : i32
    return %c0_i32, %c0_i32_0 : i32, i32
  }
  func.func @transform_6(%arg0: i32) -> (i32, i32) {
    %c0_i32 = arith.constant 0 : i32
    %c0_i32_0 = arith.constant 0 : i32
    %c0_i32_1 = arith.constant 0 : i32
    return %c0_i32, %c0_i32_0 : i32, i32
  }
  func.func @transform_7(%arg0: i32) -> (i32, i32) {
    %c0_i32 = arith.constant 0 : i32
    %c0_i32_0 = arith.constant 0 : i32
    %c0_i32_1 = arith.constant 0 : i32
    return %c0_i32, %c0_i32_0 : i32, i32
  }
  func.func @transform_8(%arg0: i32) -> (i32, i32) {
    %c0_i32 = arith.constant 0 : i32
    %c0_i32_0 = arith.constant 0 : i32
    return %arg0, %c0_i32 : i32, i32
  }
}

</mosaic_0001>

<bundles_post_ra>
// kernel: tpu_custom_call.1
= control target key start
LH: loop header
LB: loop body
LE: loop exit
PB: predicated region body
PF: predicated region fallthrough
CT: control target
= control target key end

     0   :  { %s6960_s0 = inlined_call_operand.hbm [shape: bf16[2048,128], index: 0, kind: input, shape index: {}]   ;;  %s6961_s1 = inlined_call_operand.hbm [shape: bf16[2048,128], index: 1, kind: input, shape index: {}]   ;;  %s6962_s2 = inlined_call_operand.hbm [shape: bf16[2048,128], index: 2, kind: input, shape index: {}]   ;;  %s6963_s3 = inlined_call_operand.hbm [shape: bf16[2048,128], index: 3, kind: input, shape index: {}]   ;;  %s6964_s4 = inlined_call_operand.hbm [shape: bf16[4,128,128], index: 4, kind: input, shape index: {}]   ;;  %s6965_s5 = inlined_call_operand.vmem [shape: f32[1,128], index: 5, kind: input, shape index: {}]   ;;  %s6966_s6 = inlined_call_operand.hbm [shape: bf16[128,128], index: 6, kind: input, shape index: {}]   ;;  %s6967_s7 = inlined_call_operand.vmem [shape: f32[1,128], index: 7, kind: input, shape index: {}]   ;;  %s6968_s8 = inlined_call_operand.hbm [shape: bf16[2048,128], index: 8, kind: output, shape index: {}]  }
   0x1   :  { %6989 = sst [smem:[#allocation110_spill]] %s6960_s0 }
   0x2   :  { %6990 = sst [smem:[#allocation111_spill]] %s6961_s1 }
   0x3   :  { %6991 = sst [smem:[#allocation112_spill]] %s6964_s4 }
   0x4   :  { %6992 = sst [smem:[#allocation113_spill]] %s6966_s6 }
   0x5   :  { %6993 = sst [smem:[#allocation114_spill]] %s6968_s8 }
   0x6   :  { %13 = vsyncpa [#allocation3], 0 }
   0x7   :  { %15 = vsyncpa [#allocation3 + $0x1], 0 }
   0x8   :  { %16 = vsyncpa [#allocation6], 0 }
   0x9   :  { %18 = vsyncpa [#allocation6 + $0x1], 0 }
   0xa   :  { %19 = vsyncpa [#allocation9], 0 }
   0xb   :  { %21 = vsyncpa [#allocation9 + $0x1], 0 }
   0xc   :  { %22 = vsyncpa [#allocation12], 0 }
   0xd   :  { %23 = vsyncpa [#allocation4], 0 }
   0xe   :  { %25 = vsyncpa [#allocation4 + $0x1], 0  ;;  %s5758_s27 = smov 0   ;;  %s5760_s28 = smov 0  }
   0xf   :  { %s5762_s29 = smov 0   ;;  %s5764_s30 = smov 0  }
  0x10 LB: > { %6994 = sst [smem:[#allocation20_spill]] %s5688_s27  ;;  %s5779_s9 = sadd.s32 4294967295, %s5700_s30   ;;  %s5700_s30 = sphi %s5764_s30, %s7199_s30   ;;  %s5696_s29 = sphi %s5762_s29, %s7203_s29   ;;  %s5692_s28 = sphi %s5760_s28, %s7202_s28   ;;  %s5688_s27 = sphi %s5758_s27, %s7201_s27  }
  0x11   : > { %s4062_s10 = sadd.s32 4294967294, %s5700_s30   ;;  %s5783_s11 = sadd.s32 1, %s5700_s30  }
  0x12   : > { %6995 = sst [smem:[#allocation21_spill]] %s5783_s11  ;;  %s38_s12 = sadd.s32 1, %s5696_s29 }
  0x13   : > { %s35_s13 = ssub.s32 %s5700_s30, %s5783_s11  ;;  %p45_p0 = scmp.ne.s32.totalorder %s5696_s29, %s5692_s28 }
  0x14   : > { %p36_p1 = scmp.eq.s32.totalorder %s35_s13, 0  ;;  %p46_p2 = scmp.eq.s32.totalorder %s5700_s30, 0 }
  0x15   : > { %p51_p3 = scmp.ne.s32.totalorder %s5692_s28, %s5688_s27  ;;  %p6969_p4 = scmp.eq.s32.totalorder %s5779_s9, 0 }
  0x16   : > { %s5795_s14 = scalar_select %p36_p1, %s5696_s29, %s38_s12  }
  0x17   : > { %p5797_p5 = por %p46_p2, %p45_p0  ;;  %p5803_p6 = por %p6969_p4, %p51_p3 }
  0x18   : > { %6996 = sst [smem:[#allocation22_spill]] %s5795_s14  ;;  %p237_p7 = scmp.eq.s32.totalorder %s5779_s9, 3 }
  0x19   : > { %s6998_s16 = scalar_select %p5803_p6, 1, 0 }
  0x1a   : > { %p243_p8 = scmp.eq.s32.totalorder %s4062_s10, 3  ;;  %p4063_p9 = scmp.ge.s32.totalorder %s5700_s30, 1 }
  0x1b   : > { %p250_p10 = scmp.lt.s32.totalorder %s5700_s30, 5  ;;  %p5810_p11 = por %p237_p7, %p45_p0 }
  0x1c   : > { %p5814_p12 = por %p243_p8, %p51_p3  ;;  %s5702_s20 = smov [#allocation10]  }
  0x1d   : > { %s6999_s17 = scalar_select %p5810_p11, 1, 0 }
  0x1e   : > { %s7001_s18 = scalar_select %p5814_p12, 1, 0 }
  0x1f   : > { %7000 = sst [smem:[#allocation23_spill]] %s6999_s17  ;;  %p5818_p13 = pnand %p4063_p9, %p250_p10 }
  0x20   : > { %7002 = sst [smem:[#allocation24_spill]] %s7001_s18  ;;  %s262_s21 = sshll.u32 %s5702_s20, 4  ;;  %s263_s21 = int_to_ptr.vmem [resolvable:$true] %s262_s21 }
  0x21   : > { %s7003_s19 = scalar_select %p5818_p13, 1, 0 }
  0x22   : > { %p5220_p1 = pneg %p5818_p13  ;;  %p5246_p0 = scmp.lt.s32.totalorder %s5700_s30, 4 }
  0x23   : > { %s6970_s23 = sand.u32 1, %s5696_s29   ;;  %s5467_s25 = scalar_lea.vmem %s263_s21, 4096 }
  0x24   : > { %p5826_p2 = pnand %p5220_p1, %p6969_p4  ;;  %s5834_s24 = sshll.u32 %s6970_s23, 8 }
  0x25   : > { %p5468_p7 = scmp.ne.s32.totalorder %s263_s21, %s5467_s25  ;;  %p5475_p10 = scmp.lt.s32.totalorder %s263_s21, %s263_s21 }
  0x26   : > { %s7004_s22 = scalar_select %p5826_p2, 1, 0 }
  0x27   : > { %p6979_p3 = pneg %p5826_p2  ;;  %p5476_p1 = scmp.lt.s32.totalorder %s5467_s25, %s5467_s25 }
  0x29   : > { %p5470_p8 = pnand %p5468_p7, %p6979_p3  ;;  %p5477_p4 = por %p5476_p1, %p5475_p10 }
  0x2b   : > { %p5471_p9 = pneg %p5470_p8 }
  0x2d   : > { %p5478_p12 = pnand %p5477_p4, %p5471_p9 }
  0x2f   : > { %5481 = shalt.err (!%p5478_p12)
}
  0x30   : > { %s6974_s26 = smov 64   ;;  %s6976_s10 = smov 4  }
  0x31   : > { %s7005_s4 = sld [smem:[#allocation112_spill]]  ;;  %s5850_s20 = sshll.u32 %s5700_s30, 12 }
  0x32   : > { %p5856_p4 = pnand %p5246_p0, %p5797_p5  ;;  %s6978_s23 = sand.u32 1, %s5700_s30  }
  0x33   : > { %s7007_s1 = sld [smem:[#allocation111_spill]]  ;;  %s5872_s15 = scalar_lea.sflag [#allocation6], %s6978_s23 }
  0x34   : > { %p5878_p12 = pneg %p5856_p4 }
  0x37   : > { %5223 = dma.hbm_to_vmem [thread:$0]  (!%p5826_p2), %s7005_s4, 4096, %s263_s21, [#allocation9], %s6974_s26, %s6974_s26, %s6976_s10  }
  0x38   : > { %s320_s21 = scalar_lea.vmem [#allocation5], %s5834_s24 }
  0x39   : > { %s5865_s18 = scalar_lea.hbm %s7007_s1, %s5850_s20  ;;  %s327_s12 = sshll.u32 %s320_s21, 4  ;;  %s5868_s12 = int_to_ptr.vmem [resolvable:$true] %s327_s12 }
  0x3a   : > { %s5482_s13 = scalar_lea.hbm %s5865_s18, 4096  ;;  %s5487_s21 = scalar_lea.hbm %s7007_s1, 16384 }
  0x3b   : > { %p5483_p5 = scmp.ne.s32.totalorder %s5865_s18, %s5482_s13  ;;  %p5488_p8 = scmp.lt.s32.totalorder %s5865_s18, %s7007_s1 }
  0x3c   : > { %p5489_p9 = scmp.lt.s32.totalorder %s5487_s21, %s5482_s13 }
  0x3d   : > { %p5485_p0 = pnand %p5878_p12, %p5483_p5 }
  0x3e   : > { %p5490_p10 = por %p5489_p9, %p5488_p8 }
  0x3f   : > { %p5486_p7 = pneg %p5485_p0 }
  0x41   : > { %p5491_p1 = pnand %p5490_p10, %p5486_p7 }
  0x43   : > { %5494 = shalt.err (!%p5491_p1)
}
  0x44   : > { %s5495_s23 = scalar_lea.vmem %s5868_s12, 4096  ;;  %s5705_s27 = smov [#allocation5]  }
  0x45   : > { %p5496_p3 = scmp.ne.s32.totalorder %s5868_s12, %s5495_s23  ;;  %s5500_s11 = sshll.u32 %s5705_s27, 4  ;;  %s5501_s11 = int_to_ptr.vmem [resolvable:$false] %s5500_s11 }
  0x46   : > { %s5502_s14 = scalar_lea.vmem %s5501_s11, 8192  ;;  %p5503_p11 = scmp.lt.s32.totalorder %s5868_s12, %s5501_s11 }
  0x47   : > { %p5498_p5 = pnand %p5496_p3, %p5878_p12  ;;  %p5504_p6 = scmp.lt.s32.totalorder %s5502_s14, %s5495_s23 }
  0x49   : > { %p5499_p0 = pneg %p5498_p5  ;;  %p5505_p13 = por %p5504_p6, %p5503_p11 }
  0x4b   : > { %p5506_p2 = pnand %p5505_p13, %p5499_p0 }
  0x4d   : > { %5509 = shalt.err (!%p5506_p2)
}
  0x4e   : > { %s7009_s4 = smov 4   ;;  %s7010_s10 = smov 64  }
  0x4f   : > { %5233 = dma.hbm_to_vmem [thread:$0]  (!%p5856_p4), %s5865_s18, 4096, %s5868_s12, %s5872_s15, %s7010_s10, %s7010_s10, %s7009_s4  }
  0x50   : > { %s5706_s13 = smov [#allocation11]   ;;  %s7011_s0 = sld [smem:[#allocation110_spill]] }
  0x51   : > { %s278_s27 = sshll.u32 %s5706_s13, 4  ;;  %p7012_p11 = scmp.ne.s32.totalorder %s7004_s22, 0  ;;  %s279_s27 = int_to_ptr.vmem [resolvable:$true] %s278_s27 }
  0x52   : > { %s5521_s14 = scalar_lea.vmem %s279_s27, 1024  ;;  %p5529_p7 = scmp.lt.s32.totalorder %s279_s27, %s279_s27 }
  0x53   : > { %p5522_p6 = scmp.ne.s32.totalorder %s279_s27, %s5521_s14  ;;  %p7013_p13 = pneg %p7012_p11 }
  0x54   : > { %p5530_p8 = scmp.lt.s32.totalorder %s5521_s14, %s5521_s14 }
  0x55   : > { %p5524_p2 = pnand %p5522_p6, %p7013_p13 }
  0x56   : > { %s5908_s23 = scalar_lea.hbm %s7011_s0, %s5850_s20  ;;  %p5531_p9 = por %p5530_p8, %p5529_p7 }
  0x57   : > { %p5525_p3 = pneg %p5524_p2 }
  0x59   : > { %p5532_p10 = pnand %p5531_p9, %p5525_p3 }
  0x5b   : > { %5535 = shalt.err (!%p5532_p10)
}
  0x5c   : > { %s7014_s6 = sld [smem:[#allocation113_spill]]  ;;  %s299_s13 = scalar_lea.vmem [#allocation2], %s5834_s24 }
  0x5d   : > { %s306_s21 = sshll.u32 %s299_s13, 4  ;;  %s5928_s14 = scalar_lea.hbm %s6962_s2, %s5850_s20  ;;  %s5922_s21 = int_to_ptr.vmem [resolvable:$true] %s306_s21 }
  0x5e   : > { %s7015_s1 = sand.u32 1, %s5696_s29   ;;  %s5536_s18 = scalar_lea.hbm %s5908_s23, 4096 }
  0x5f   : > { %s296_s8 = scalar_lea.sflag [#allocation3], %s7015_s1  ;;  %p5537_p1 = scmp.ne.s32.totalorder %s5908_s23, %s5536_s18 }
  0x60   : > { %p5542_p6 = scmp.lt.s32.totalorder %s5908_s23, %s7011_s0 }
  0x61   : > { %p5539_p5 = pnand %p5537_p1, %p5878_p12 }
  0x62   : > { %5226 = dma.hbm_to_vmem [thread:$0]  (!%p7012_p11), %s7014_s6, 1024, %s279_s27, [#allocation12], %s7010_s10, %s7010_s10, %s7009_s4  }
  0x63   : > { %p5540_p0 = pneg %p5539_p5  ;;  %s5541_s27 = scalar_lea.hbm %s7011_s0, 16384 }
  0x64   : > { %p5543_p11 = scmp.lt.s32.totalorder %s5541_s27, %s5536_s18 }
  0x66   : > { %p5544_p13 = por %p5543_p11, %p5542_p6 }
  0x68   : > { %p5545_p2 = pnand %p5544_p13, %p5540_p0 }
  0x6a   : > { %5548 = shalt.err (!%p5545_p2)
}
  0x6b   : > { %s5549_s1 = scalar_lea.vmem %s5922_s21, 4096  ;;  %s5707_s11 = smov [#allocation2]  }
  0x6c   : > { %p5550_p3 = scmp.ne.s32.totalorder %s5922_s21, %s5549_s1  ;;  %s5554_s17 = sshll.u32 %s5707_s11, 4  ;;  %s5555_s17 = int_to_ptr.vmem [resolvable:$false] %s5554_s17 }
  0x6d   : > { %s5556_s22 = scalar_lea.vmem %s5555_s17, 8192  ;;  %p5557_p9 = scmp.lt.s32.totalorder %s5922_s21, %s5555_s17 }
  0x6e   : > { %p5552_p7 = pnand %p5550_p3, %p5878_p12  ;;  %p5558_p10 = scmp.lt.s32.totalorder %s5556_s22, %s5549_s1 }
  0x70   : > { %p5553_p8 = pneg %p5552_p7  ;;  %p5559_p1 = por %p5558_p10, %p5557_p9 }
  0x72   : > { %p5560_p5 = pnand %p5559_p1, %p5553_p8 }
  0x74   : > { %5563 = shalt.err (!%p5560_p5)
}
  0x75   : > { %5230 = dma.hbm_to_vmem [thread:$0]  (!%p5856_p4), %s5908_s23, 4096, %s5922_s21, %s296_s8, %s7010_s10, %s7010_s10, %s7009_s4  }
  0x76   : > { %s341_s6 = scalar_lea.vmem [#allocation7], %s5834_s24  ;;  %s5962_s13 = scalar_lea.hbm %s6963_s3, %s5850_s20 }
  0x77   : > { %s348_s18 = sshll.u32 %s341_s6, 4  ;;  %s5564_s1 = scalar_lea.hbm %s5928_s14, 4096  ;;  %s5956_s18 = int_to_ptr.vmem [resolvable:$true] %s348_s18 }
  0x78   : > { %p5565_p0 = scmp.ne.s32.totalorder %s5928_s14, %s5564_s1  ;;  %s5569_s22 = scalar_lea.hbm %s6962_s2, 16384 }
  0x79   : > { %p5570_p13 = scmp.lt.s32.totalorder %s5928_s14, %s6962_s2  ;;  %p5571_p2 = scmp.lt.s32.totalorder %s5569_s22, %s5564_s1 }
  0x7a   : > { %p5567_p6 = pnand %p5565_p0, %p5878_p12 }
  0x7b   : > { %p5572_p3 = por %p5571_p2, %p5570_p13 }
  0x7c   : > { %p5568_p11 = pneg %p5567_p6 }
  0x7e   : > { %p5573_p7 = pnand %p5572_p3, %p5568_p11 }
  0x80   : > { %5576 = shalt.err (!%p5573_p7)
}
  0x81   : > { %s5577_s20 = scalar_lea.vmem %s5956_s18, 4096  ;;  %s5708_s23 = smov [#allocation7]  }
  0x82   : > { %p5578_p8 = scmp.ne.s32.totalorder %s5956_s18, %s5577_s20  ;;  %s5582_s21 = sshll.u32 %s5708_s23, 4  ;;  %s5583_s21 = int_to_ptr.vmem [resolvable:$false] %s5582_s21 }
  0x83   : > { %s5584_s6 = scalar_lea.vmem %s5583_s21, 8192  ;;  %p5585_p1 = scmp.lt.s32.totalorder %s5956_s18, %s5583_s21 }
  0x84   : > { %p5580_p9 = pnand %p5578_p8, %p5878_p12  ;;  %p5586_p5 = scmp.lt.s32.totalorder %s5584_s6, %s5577_s20 }
  0x86   : > { %p5581_p10 = pneg %p5580_p9  ;;  %p5587_p0 = por %p5586_p5, %p5585_p1 }
  0x88   : > { %p5588_p6 = pnand %p5587_p0, %p5581_p10 }
  0x8a   : > { %5591 = shalt.err (!%p5588_p6)
}
  0x8b   : > { %5236 = dma.hbm_to_vmem [thread:$0]  (!%p5856_p4), %s5928_s14, 4096, %s5956_s18, %s5872_s15, %s7010_s10, %s7010_s10, %s7009_s4  }
  0x8c   : > { %s362_s0 = scalar_lea.vmem [#allocation8], %s5834_s24  ;;  %s7016_s27 = sand.u32 1, %s5700_s30  }
  0x8d   : > { %s369_s12 = sshll.u32 %s362_s0, 4  ;;  %s359_s1 = scalar_lea.sflag [#allocation9], %s7016_s27  ;;  %s5989_s12 = int_to_ptr.vmem [resolvable:$true] %s369_s12 }
  0x8e   : > { %s5592_s11 = scalar_lea.hbm %s5962_s13, 4096  ;;  %s5597_s8 = scalar_lea.hbm %s6963_s3, 16384 }
  0x8f   : > { %p5593_p11 = scmp.ne.s32.totalorder %s5962_s13, %s5592_s11  ;;  %p5598_p3 = scmp.lt.s32.totalorder %s5962_s13, %s6963_s3 }
  0x90   : > { %p5599_p7 = scmp.lt.s32.totalorder %s5597_s8, %s5592_s11 }
  0x91   : > { %p5595_p13 = pnand %p5593_p11, %p5878_p12 }
  0x92   : > { %p5600_p8 = por %p5599_p7, %p5598_p3 }
  0x93   : > { %p5596_p2 = pneg %p5595_p13 }
  0x95   : > { %p5601_p9 = pnand %p5600_p8, %p5596_p2 }
  0x97   : > { %5604 = shalt.err (!%p5601_p9)
}
  0x98   : > { %s5605_s24 = scalar_lea.vmem %s5989_s12, 4096  ;;  %s5709_s15 = smov [#allocation8]  }
  0x99   : > { %p5606_p10 = scmp.ne.s32.totalorder %s5989_s12, %s5605_s24  ;;  %s5610_s14 = sshll.u32 %s5709_s15, 4  ;;  %s5611_s14 = int_to_ptr.vmem [resolvable:$false] %s5610_s14 }
  0x9a   : > { %s5612_s18 = scalar_lea.vmem %s5611_s14, 8192  ;;  %p5613_p0 = scmp.lt.s32.totalorder %s5989_s12, %s5611_s14 }
  0x9b   : > { %p5608_p1 = pnand %p5606_p10, %p5878_p12  ;;  %p5614_p6 = scmp.lt.s32.totalorder %s5612_s18, %s5605_s24 }
  0x9d   : > { %p5609_p5 = pneg %p5608_p1  ;;  %p5615_p11 = por %p5614_p6, %p5613_p0 }
  0x9f   : > { %p5616_p13 = pnand %p5615_p11, %p5609_p5 }
  0xa1   : > { %5619 = shalt.err (!%p5616_p13)
}
  0xa2   : > { %5239 = dma.hbm_to_vmem [thread:$0]  (!%p5856_p4), %s5962_s13, 4096, %s5989_s12, %s359_s1, %s7010_s10, %s7010_s10, %s7009_s4  }
  0xa3   : > { %p7017_p12 = scmp.ne.s32.totalorder %s7003_s19, 0 }
  0xa5   : > { %381 = sbr.rel (%p7017_p12) target bundleno = 957 (0x3bd), region = 52 }
  0xaa   : > { %s6019_s26 = sand.u32 1, %s5692_s28   ;;  %p7018_p2 = scmp.ne.s32.totalorder %s6998_s16, 0 }
  0xab   : > { %s6022_s21 = sshll.u32 %s6019_s26, 8  ;;  %s384_s6 = scalar_lea.sflag [#allocation3], %s6019_s26 }
  0xac   : > { %s6026_s25 = scalar_lea.vmem [#allocation2], %s6022_s21 }
  0xad   : > { %5663 = dma.done.wait (%p7018_p2), %s384_s6, 4096  }
  0xae   : > { %5665 = vsyncadd (%p7018_p2), %s384_s6, 4294963200  ;;  %s392_s19 = sand.u32 1, %s5779_s9   ;;  %s6034_s10 = scalar_lea.vmem [#allocation5], %s6022_s21 }
  0xaf   : > { %s393_s4 = scalar_lea.sflag [#allocation6], %s392_s19 }
  0xb0   : > { %5667 = dma.done.wait (%p7018_p2), %s393_s4, 8192  }
  0xb1   : > { %5669 = vsyncadd (%p7018_p2), %s393_s4, 4294959104  ;;  %s6041_s13 = scalar_lea.vmem [#allocation7], %s6022_s21  ;;  %s411_s0 = scalar_lea.sflag [#allocation9], %s392_s19 }
  0xb2   : > { %s6044_s12 = scalar_lea.vmem [#allocation8], %s6022_s21 }
  0xb3   : > { %5671 = dma.done.wait (%p7018_p2), %s411_s0, 4096  }
  0xb4   : > { %5673 = vsyncadd (%p7018_p2), %s411_s0, 4294963200  ;;  %p7019_p4 = scmp.eq.s32.totalorder %s5779_s9, 0 }
  0xb6   : > { %5675 = dma.done.wait (%p7019_p4), [#allocation9], 4096   ;;  %p7020_p3 = pmov %p7019_p4 }
  0xb8   : > { %5677 = vsyncadd (%p7020_p3), [#allocation9], 4294963200  ;;  %p7021_p7 = pmov %p7020_p3 }
  0xb9   : > { %p7022_p8 = pmov %p7020_p3 }
  0xba   : > { %5679 = dma.done.wait (%p7021_p7), [#allocation12], 1024  }
  0xbb   : > { %5681 = vsyncadd (%p7022_p8), [#allocation12], 4294966272  ;;  %v5288_v0 = vld [vmem:[#allocation10 + $0x78] sm:$0xff]   ;;  %v5289_v1 = vld [vmem:[#allocation10 + $0x70] sm:$0xff]   ;;  %s6817_s17 = scalar_lea.vmem [#allocation13], %s6022_s21  ;;  %s7193_s22 = sld [smem:[#allocation23_spill]] }
  0xbc   : > { %5186 = vmatprep.subr.bf16.mxu1 %v5288_v0  ;;  %4786 = vmatprep.subr.bf16.mxu0 %v5288_v0  ;;  %v5290_v2 = vld [vmem:[#allocation10 + $0x68] sm:$0xff]   ;;  %v5291_v3 = vld [vmem:[#allocation10 + $0x60] sm:$0xff]   ;;  %v5292_v6 = vld [vmem:[#allocation10 + $0x58] sm:$0xff]   ;;  %s4394_s8 = sshll.u32 %s5779_s9, 12  ;;  %s3904_s20 = sshll.u32 %s6817_s17, 4  ;;  %s6916_s20 = int_to_ptr.vmem [resolvable:$true] %s3904_s20 }
  0xbd   : > { %5194 = vmatpush3.bf16.msra.mxu1 %v5288_v0  ;;  %4787 = vmatpush3.bf16.msra.mxu0 %v5288_v0  ;;  %v5296_v4 = vld [vmem:[%s6034_s10 + $0x80] sm:$0xff]   ;;  %v5293_v7 = vld [vmem:[#allocation10 + $0x50] sm:$0xff]   ;;  %v5294_v8 = vld [vmem:[#allocation10 + $0x48] sm:$0xff]   ;;  %s7194_s15 = sld [smem:[#allocation114_spill]]  ;;  %s3891_s9 = scalar_lea.sflag [#allocation4], %s6019_s26 }
  0xbe   : > { %5187 = vmatprep.subr.bf16.mxu1 %v5289_v1  ;;  %4788 = vmatprep.subr.bf16.mxu0 %v5289_v1  ;;  %v5299_v5 = vld [vmem:[%s6034_s10] sm:$0xff]   ;;  %v5297_v10 = vld [vmem:[%s6034_s10 + $0x88] sm:$0xff]   ;;  %v5298_v11 = vld [vmem:[#allocation10 + $0x38] sm:$0xff]   ;;  %s5620_s18 = scalar_lea.vmem %s6916_s20, 4096  ;;  %s5710_s21 = smov [#allocation13]  }
  0xbf   : > { %4834 = vmatprep.mubr.bf16.mxu1 %v5296_v4  ;;  %4802 = vmatprep.mubr.bf16.mxu0 %v5299_v5  ;;  %v5295_v9 = vld [vmem:[#allocation10 + $0x40] sm:$0xff]   ;;  %v5300_v12 = vld [vmem:[%s6034_s10 + $0x8] sm:$0xff]   ;;  %v5301_v13 = vld [vmem:[%s6034_s10 + $0x90] sm:$0xff]   ;;  %p5621_p9 = scmp.ne.s32.totalorder %s6916_s20, %s5620_s18  ;;  %s5624_s6 = sshll.u32 %s5710_s21, 4  ;;  %s5625_s6 = int_to_ptr.vmem [resolvable:$false] %s5624_s6 }
  0xc0   : > { %v5303_v14 = vld [vmem:[#allocation10 + $0x30] sm:$0xff]   ;;  %v5321_v16 = vld [vmem:[#allocation10 + $0xb8] sm:$0xff]   ;;  %v5308_v19 = vld [vmem:[#allocation10 + $0x28] sm:$0xff]   ;;  %p5627_p0 = scmp.lt.s32.totalorder %s6916_s20, %s5625_s6 }
  0xc1   : > { %5195 = vmatpush3.bf16.msra.mxu1 %v5289_v1  ;;  %4789 = vmatpush3.bf16.msra.mxu0 %v5289_v1  ;;  %v5304_v15 = vld [vmem:[%s6034_s10 + $0x10] sm:$0xff]   ;;  %v5302_v18 = vld [vmem:[%s6034_s10 + $0x98] sm:$0xff]   ;;  %v5306_v21 = vld [vmem:[%s6034_s10 + $0xa0] sm:$0xff]   ;;  %p7195_p10 = scmp.ne.s32.totalorder %s7193_s22, 0 }
  0xc2   : > { %5188 = vmatprep.subr.bf16.mxu1 %v5290_v2  ;;  %4790 = vmatprep.subr.bf16.mxu0 %v5290_v2  ;;  %v5322_v17 = vld [vmem:[#allocation10 + $0xb0] sm:$0xff]   ;;  %v5305_v20 = vld [vmem:[%s6034_s10 + $0x18] sm:$0xff]   ;;  %v5309_v22 = vld [vmem:[%s6034_s10 + $0x20] sm:$0xff]  }
  0xc3   : > { %v5313_v23 = vld [vmem:[#allocation10 + $0x20] sm:$0xff]   ;;  %v5328_v24 = vld [vmem:[#allocation10 + $0xa8] sm:$0xff]   ;;  %v5318_v27 = vld [vmem:[#allocation10 + $0x18] sm:$0xff]   ;;  %s6914_s14 = scalar_lea.hbm %s7194_s15, %s4394_s8  ;;  %p5622_p1 = pnand %p5621_p9, %p7195_p10 }
  0xc4   : > { %v5307_v25 = vld [vmem:[%s6034_s10 + $0xa8] sm:$0xff]   ;;  %v5329_v28 = vld [vmem:[#allocation10 + $0xa0] sm:$0xff]   ;;  %v5311_v29 = vld [vmem:[%s6034_s10 + $0xb0] sm:$0xff]  }
  0xc5   : > { %5196 = vmatpush3.bf16.msra.mxu1 %v5290_v2  ;;  %4791 = vmatpush3.bf16.msra.mxu0 %v5290_v2  ;;  %v5310_v26 = vld [vmem:[%s6034_s10 + $0x28] sm:$0xff]   ;;  %v5314_v30 = vld [vmem:[%s6034_s10 + $0x30] sm:$0xff]   ;;  %v5335_v32 = vld [vmem:[#allocation10 + $0x98] sm:$0xff]   ;;  %p5623_p5 = pneg %p5622_p1 }
  0xc6   : > { %5189 = vmatprep.subr.bf16.mxu1 %v5291_v3  ;;  %4792 = vmatprep.subr.bf16.mxu0 %v5291_v3  ;;  %v5325_v31 = vld [vmem:[#allocation10 + $0x10] sm:$0xff]   ;;  %v5312_v33 = vld [vmem:[%s6034_s10 + $0xb8] sm:$0xff]   ;;  %v5332_v35 = vld [vmem:[#allocation10 + $0x8] sm:$0xff]  }
  0xc7   : > { %v5315_v34 = vld [vmem:[%s6034_s10 + $0x38] sm:$0xff]   ;;  %v5336_v36 = vld [vmem:[#allocation10 + $0x90] sm:$0xff]   ;;  %v5316_v37 = vld [vmem:[%s6034_s10 + $0xc0] sm:$0xff]  }
  0xc8   : > { %v5319_v38 = vld [vmem:[%s6034_s10 + $0x40] sm:$0xff]   ;;  %v5342_v40 = vld [vmem:[#allocation10 + $0x88] sm:$0xff]   ;;  %v5346_v44 = vld [vmem:[#allocation10 + $0xf8] sm:$0xff]  }
  0xc9   : > { %5197 = vmatpush3.bf16.msra.mxu1 %v5291_v3  ;;  %4793 = vmatpush3.bf16.msra.mxu0 %v5291_v3  ;;  %v5339_v39 = vld [vmem:[#allocation10] sm:$0xff]   ;;  %v5317_v41 = vld [vmem:[%s6034_s10 + $0xc8] sm:$0xff]   ;;  %v5323_v45 = vld [vmem:[%s6034_s10 + $0xd0] sm:$0xff]  }
  0xca   : > { %5190 = vmatprep.subr.bf16.mxu1 %v5292_v6  ;;  %4794 = vmatprep.subr.bf16.mxu0 %v5292_v6  ;;  %v5320_v42 = vld [vmem:[%s6034_s10 + $0x48] sm:$0xff]   ;;  %v5343_v43 = vld [vmem:[#allocation10 + $0x80] sm:$0xff]   ;;  %v5326_v46 = vld [vmem:[%s6034_s10 + $0x50] sm:$0xff]  }
  0xcb   : > { %v5324_v47 = vld [vmem:[%s6034_s10 + $0xd8] sm:$0xff]   ;;  %v5330_v49 = vld [vmem:[%s6034_s10 + $0xe0] sm:$0xff]   ;;  %v5331_v51 = vld [vmem:[%s6034_s10 + $0xe8] sm:$0xff]  }
  0xcc   : > { %v5327_v48 = vld [vmem:[%s6034_s10 + $0x58] sm:$0xff]   ;;  %v5333_v50 = vld [vmem:[%s6034_s10 + $0x60] sm:$0xff]   ;;  %v5334_v52 = vld [vmem:[%s6034_s10 + $0x68] sm:$0xff]  }
  0xcd   : > { %5198 = vmatpush3.bf16.msra.mxu1 %v5292_v6  ;;  %4795 = vmatpush3.bf16.msra.mxu0 %v5292_v6  ;;  %v5337_v53 = vld [vmem:[%s6034_s10 + $0xf0] sm:$0xff]   ;;  %v5338_v55 = vld [vmem:[%s6034_s10 + $0xf8] sm:$0xff]   ;;  %v5344_v57 = vld [vmem:[%s6026_s25] sm:$0xff]  }
  0xce   : > { %5191 = vmatprep.subr.bf16.mxu1 %v5293_v7  ;;  %4796 = vmatprep.subr.bf16.mxu0 %v5293_v7  ;;  %v5340_v54 = vld [vmem:[%s6034_s10 + $0x70] sm:$0xff]   ;;  %v5341_v56 = vld [vmem:[%s6034_s10 + $0x78] sm:$0xff]   ;;  %v5347_v58 = vld [vmem:[%s6041_s13] sm:$0xff]  }
  0xcf   : > { %v5345_v59 = vld [vmem:[%s6026_s25 + $0x8] sm:$0xff]   ;;  %v5349_v61 = vld [vmem:[%s6026_s25 + $0x10] sm:$0xff]   ;;  %v5350_v0 = vld [vmem:[%s6026_s25 + $0x18] sm:$0xff]  }
  0xd0   : > { %v5348_v60 = vld [vmem:[%s6041_s13 + $0x8] sm:$0xff]   ;;  %v5351_v62 = vld [vmem:[%s6041_s13 + $0x10] sm:$0xff]   ;;  %v5352_v2 = vld [vmem:[%s6041_s13 + $0x18] sm:$0xff]  }
  0xd1   : > { %5199 = vmatpush3.bf16.msra.mxu1 %v5293_v7  ;;  %4797 = vmatpush3.bf16.msra.mxu0 %v5293_v7  ;;  %v5355_v63 = vld [vmem:[#allocation10 + $0xf0] sm:$0xff]   ;;  %v5364_v1 = vld [vmem:[#allocation10 + $0xe8] sm:$0xff]   ;;  %v5353_v3 = vld [vmem:[%s6026_s25 + $0x20] sm:$0xff]  }
  0xd2   : > { %5192 = vmatprep.subr.bf16.mxu1 %v5294_v8  ;;  %4798 = vmatprep.subr.bf16.mxu0 %v5294_v8  ;;  %v5356_v4 = vld [vmem:[%s6041_s13 + $0x20] sm:$0xff]   ;;  %v5354_v6 = vld [vmem:[%s6026_s25 + $0x28] sm:$0xff]  }
  0xd3   : > { %v5373_v5 = vld [vmem:[#allocation10 + $0xe0] sm:$0xff]   ;;  %v5357_v7 = vld [vmem:[%s6041_s13 + $0x28] sm:$0xff]  }
  0xd5   : > { %5200 = vmatpush3.bf16.msra.mxu1 %v5294_v8  ;;  %4799 = vmatpush3.bf16.msra.mxu0 %v5294_v8  ;;  %v5382_v8 = vld [vmem:[#allocation10 + $0xd8] sm:$0xff]  }
  0xd6   : > { %5193 = vmatprep.subr.bf16.mxu1 %v5295_v9  ;;  %4800 = vmatprep.subr.bf16.mxu0 %v5295_v9 }
  0xd9   : > { %5201 = vmatpush3.bf16.msra.mxu1 %v5295_v9  ;;  %4801 = vmatpush3.bf16.msra.mxu0 %v5295_v9  ;;  %v5358_v9 = vld [vmem:[%s6026_s25 + $0x30] sm:$0xff]  }
  0xda   : > { %4866 = vmatprep.subr.bf16.mxu1 %v5298_v11  ;;  %4946 = vmatprep.subr.bf16.mxu0 %v5321_v16 }
  0xdc   : > { %4835 = vmatmul.mubr.bf16.vlgmr.msra.gmra.mxu1 %v5297_v10  ;;  %4803 = vmatmul.mubr.bf16.vlgmr.msra.gmra.mxu0 %v5300_v12  ;;  %v5360_v10 = vld [vmem:[%s6041_s13 + $0x30] sm:$0xff]   ;;  %v5359_v12 = vld [vmem:[%s6026_s25 + $0x38] sm:$0xff]  }
  0xdd   : > { %4867 = vmatpush3.bf16.msra.mxu1 %v5298_v11  ;;  %4838 = vmatprep.mubr.bf16.mxu1 %v5301_v13  ;;  %v5391_v11 = vld [vmem:[#allocation10 + $0xd0] sm:$0xff]   ;;  %v5361_v13 = vld [vmem:[%s6041_s13 + $0x38] sm:$0xff]  }
  0xde   : > { %4868 = vmatprep.subr.bf16.mxu1 %v5303_v14  ;;  %4806 = vmatprep.mubr.bf16.mxu0 %v5304_v15  ;;  %v5362_v15 = vld [vmem:[%s6026_s25 + $0x40] sm:$0xff]  }
  0xdf   : > { %4947 = vmatpush3.bf16.msra.mxu0 %v5321_v16  ;;  %v5365_v16 = vld [vmem:[%s6041_s13 + $0x40] sm:$0xff]  }
  0xe0   : > { %4948 = vmatprep.subr.bf16.mxu0 %v5322_v17 }
  0xe1   : > { %4869 = vmatpush3.bf16.msra.mxu1 %v5303_v14  ;;  %v5400_v14 = vld [vmem:[#allocation10 + $0xc8] sm:$0xff]  }
  0xe2   : > { %4870 = vmatprep.subr.bf16.mxu1 %v5308_v19 }
  0xe3   : > { %4949 = vmatpush3.bf16.msra.mxu0 %v5322_v17  ;;  %v5409_v17 = vld [vmem:[#allocation10 + $0xc0] sm:$0xff]  }
  0xe4   : > { %4839 = vmatmul.mubr.bf16.gmra.mxu1 %v5302_v18  ;;  %4807 = vmatmul.mubr.bf16.gmra.mxu0 %v5305_v20  ;;  %v5363_v18 = vld [vmem:[%s6026_s25 + $0x48] sm:$0xff]   ;;  %v5367_v20 = vld [vmem:[%s6026_s25 + $0x50] sm:$0xff]  }
  0xe5   : > { %4842 = vmatprep.mubr.bf16.mxu1 %v5306_v21  ;;  %4810 = vmatprep.mubr.bf16.mxu0 %v5309_v22  ;;  %v5369_v21 = vld [vmem:[%s6041_s13 + $0x50] sm:$0xff]   ;;  %v5368_v22 = vld [vmem:[%s6026_s25 + $0x58] sm:$0xff]  }
  0xe6   : > { %4871 = vmatpush3.bf16.msra.mxu1 %v5308_v19  ;;  %4950 = vmatprep.subr.bf16.mxu0 %v5328_v24  ;;  %v5366_v19 = vld [vmem:[%s6041_s13 + $0x48] sm:$0xff]  }
  0xe7   : > { %4872 = vmatprep.subr.bf16.mxu1 %v5313_v23  ;;  %4951 = vmatpush3.bf16.msra.mxu0 %v5328_v24  ;;  %v5371_v24 = vld [vmem:[%s6026_s25 + $0x60] sm:$0xff]  }
  0xe8   : > { %4952 = vmatprep.subr.bf16.mxu0 %v5329_v28 }
  0xea   : > { %4873 = vmatpush3.bf16.msra.mxu1 %v5313_v23  ;;  %v5370_v23 = vld [vmem:[%s6041_s13 + $0x58] sm:$0xff]  }
  0xeb   : > { %4874 = vmatprep.subr.bf16.mxu1 %v5318_v27  ;;  %4953 = vmatpush3.bf16.msra.mxu0 %v5329_v28  ;;  %v5376_v28 = vld [vmem:[%s6026_s25 + $0x70] sm:$0xff]  }
  0xec   : > { %4843 = vmatmul.mubr.bf16.gmra.mxu1 %v5307_v25  ;;  %4811 = vmatmul.mubr.bf16.gmra.mxu0 %v5310_v26  ;;  %v5374_v25 = vld [vmem:[%s6041_s13 + $0x60] sm:$0xff]   ;;  %v5372_v26 = vld [vmem:[%s6026_s25 + $0x68] sm:$0xff]  }
  0xed   : > { %4846 = vmatprep.mubr.bf16.mxu1 %v5311_v29  ;;  %4814 = vmatprep.mubr.bf16.mxu0 %v5314_v30  ;;  %v5378_v29 = vld [vmem:[%s6041_s13 + $0x70] sm:$0xff]   ;;  %v5377_v30 = vld [vmem:[%s6026_s25 + $0x78] sm:$0xff]  }
  0xee   : > { %4875 = vmatpush3.bf16.msra.mxu1 %v5318_v27  ;;  %4954 = vmatprep.subr.bf16.mxu0 %v5335_v32  ;;  %v5375_v27 = vld [vmem:[%s6041_s13 + $0x68] sm:$0xff]  }
  0xef   : > { %4876 = vmatprep.subr.bf16.mxu1 %v5325_v31  ;;  %4955 = vmatpush3.bf16.msra.mxu0 %v5335_v32  ;;  %v5380_v32 = vld [vmem:[%s6026_s25 + $0x80] sm:$0xff]  }
  0xf0   : > { %4956 = vmatprep.subr.bf16.mxu0 %v5336_v36 }
  0xf2   : > { %4877 = vmatpush3.bf16.msra.mxu1 %v5325_v31  ;;  %v5379_v31 = vld [vmem:[%s6041_s13 + $0x78] sm:$0xff]  }
  0xf3   : > { %4878 = vmatprep.subr.bf16.mxu1 %v5332_v35  ;;  %4957 = vmatpush3.bf16.msra.mxu0 %v5336_v36  ;;  %v5385_v36 = vld [vmem:[%s6026_s25 + $0x90] sm:$0xff]  }
  0xf4   : > { %4847 = vmatmul.mubr.bf16.gmra.mxu1 %v5312_v33  ;;  %4815 = vmatmul.mubr.bf16.gmra.mxu0 %v5315_v34  ;;  %v5383_v33 = vld [vmem:[%s6041_s13 + $0x80] sm:$0xff]   ;;  %v5381_v34 = vld [vmem:[%s6026_s25 + $0x88] sm:$0xff]  }
  0xf5   : > { %4850 = vmatprep.mubr.bf16.mxu1 %v5316_v37  ;;  %4818 = vmatprep.mubr.bf16.mxu0 %v5319_v38  ;;  %v5387_v37 = vld [vmem:[%s6041_s13 + $0x90] sm:$0xff]   ;;  %v5386_v38 = vld [vmem:[%s6026_s25 + $0x98] sm:$0xff]  }
  0xf6   : > { %4879 = vmatpush3.bf16.msra.mxu1 %v5332_v35  ;;  %4958 = vmatprep.subr.bf16.mxu0 %v5342_v40  ;;  %v5384_v35 = vld [vmem:[%s6041_s13 + $0x88] sm:$0xff]  }
  0xf7   : > { %4880 = vmatprep.subr.bf16.mxu1 %v5339_v39  ;;  %4959 = vmatpush3.bf16.msra.mxu0 %v5342_v40  ;;  %v5389_v40 = vld [vmem:[%s6026_s25 + $0xa0] sm:$0xff]  }
  0xf8   : > { %4960 = vmatprep.subr.bf16.mxu0 %v5343_v43 }
  0xfa   : > { %4881 = vmatpush3.bf16.msra.mxu1 %v5339_v39  ;;  %v5388_v39 = vld [vmem:[%s6041_s13 + $0x98] sm:$0xff]  }
  0xfb   : > { %5026 = vmatprep.subr.bf16.mxu1 %v5346_v44  ;;  %4961 = vmatpush3.bf16.msra.mxu0 %v5343_v43  ;;  %v5393_v43 = vld [vmem:[%s6041_s13 + $0xa8] sm:$0xff]  }
  0xfc   : > { %4851 = vmatmul.mubr.bf16.gmra.mxu1 %v5317_v41  ;;  %4819 = vmatmul.mubr.bf16.gmra.mxu0 %v5320_v42  ;;  %v5392_v41 = vld [vmem:[%s6041_s13 + $0xa0] sm:$0xff]   ;;  %v5390_v42 = vld [vmem:[%s6026_s25 + $0xa8] sm:$0xff]  }
  0xfd   : > { %4854 = vmatprep.mubr.bf16.mxu1 %v5323_v45  ;;  %4822 = vmatprep.mubr.bf16.mxu0 %v5326_v46  ;;  %v5396_v45 = vld [vmem:[%s6041_s13 + $0xb0] sm:$0xff]   ;;  %v5438_v46 = vld [vmem:[#allocation11 + $0x38] sm:$0xff]  }
  0xfe   : > { %5106 = vmatprep.subr.bf16.mxu0 %v5438_v46 }
 0x104   : > { %4855 = vmatmul.mubr.bf16.gmra.mxu1 %v5324_v47  ;;  %4823 = vmatmul.mubr.bf16.gmra.mxu0 %v5327_v48  ;;  %v5395_v47 = vld [vmem:[%s6026_s25 + $0xb8] sm:$0xff]  }
 0x105   : > { %4858 = vmatprep.mubr.bf16.mxu1 %v5330_v49  ;;  %4826 = vmatprep.mubr.bf16.mxu0 %v5333_v50  ;;  %v5397_v48 = vld [vmem:[%s6041_s13 + $0xb8] sm:$0xff]   ;;  %v5398_v49 = vld [vmem:[%s6026_s25 + $0xc0] sm:$0xff]  }
 0x106   : > { %v5401_v50 = vld [vmem:[%s6041_s13 + $0xc0] sm:$0xff]  }
 0x10c   : > { %4859 = vmatmul.mubr.bf16.gmra.mxu1 %v5331_v51  ;;  %4827 = vmatmul.mubr.bf16.gmra.mxu0 %v5334_v52  ;;  %v5399_v51 = vld [vmem:[%s6026_s25 + $0xc8] sm:$0xff]  }
 0x10d   : > { %4862 = vmatprep.mubr.bf16.mxu1 %v5337_v53  ;;  %4830 = vmatprep.mubr.bf16.mxu0 %v5340_v54  ;;  %v5402_v52 = vld [vmem:[%s6041_s13 + $0xc8] sm:$0xff]   ;;  %v5403_v53 = vld [vmem:[%s6026_s25 + $0xd0] sm:$0xff]  }
 0x10e   : > { %v5405_v54 = vld [vmem:[%s6041_s13 + $0xd0] sm:$0xff]  }
 0x114   : > { %4863 = vmatmul.mubr.bf16.gmra.mxu1 %v5338_v55  ;;  %4831 = vmatmul.mubr.bf16.gmra.mxu0 %v5341_v56  ;;  %v5443_v55 = vld [vmem:[#allocation11 + $0x30] sm:$0xff]   ;;  %v5404_v56 = vld [vmem:[%s6026_s25 + $0xd8] sm:$0xff]  }
 0x115   : > { %4882 = vmatprep.mubr.bf16.mxu1 %v5344_v57  ;;  %4962 = vmatprep.mubr.bf16.mxu0 %v5347_v58  ;;  %v5406_v57 = vld [vmem:[%s6041_s13 + $0xd8] sm:$0xff]   ;;  %v5407_v58 = vld [vmem:[%s6026_s25 + $0xe0] sm:$0xff]  }
 0x11c   : > { %4883 = vmatmul.mubr.bf16.vlgmr.msra.gmra.mxu1 %v5345_v59  ;;  %4963 = vmatmul.mubr.bf16.vlgmr.msra.gmra.mxu0 %v5348_v60  ;;  %v5410_v59 = vld [vmem:[%s6041_s13 + $0xe0] sm:$0xff]   ;;  %v5408_v60 = vld [vmem:[%s6026_s25 + $0xe8] sm:$0xff]  }
 0x11d   : > { %5027 = vmatpush3.bf16.msra.mxu1 %v5346_v44  ;;  %4886 = vmatprep.mubr.bf16.mxu1 %v5349_v61  ;;  %v5394_v44 = vld [vmem:[%s6026_s25 + $0xb0] sm:$0xff]   ;;  %v5411_v61 = vld [vmem:[%s6041_s13 + $0xe8] sm:$0xff]  }
 0x11e   : > { %4966 = vmatprep.mubr.bf16.mxu0 %v5351_v62  ;;  %5028 = vmatprep.subr.bf16.mxu1 %v5355_v63  ;;  %v5412_v62 = vld [vmem:[%s6026_s25 + $0xf0] sm:$0xff]  }
 0x11f   : > { %5107 = vmatpush3.bf16.msra.mxu0 %v5438_v46 }
 0x120   : > { %5108 = vmatprep.subr.bf16.mxu0 %v5443_v55 }
 0x121   : > { %5029 = vmatpush3.bf16.msra.mxu1 %v5355_v63  ;;  %v5414_v63 = vld [vmem:[%s6041_s13 + $0xf0] sm:$0xff]  }
 0x122   : > { %5030 = vmatprep.subr.bf16.mxu1 %v5364_v1 }
 0x123   : > { %5109 = vmatpush3.bf16.msra.mxu0 %v5443_v55  ;;  %v5427_v55 = vld [vmem:[%s6044_s12 + $0x58] sm:$0xff]  }
 0x124   : > { %4887 = vmatmul.mubr.bf16.gmra.mxu1 %v5350_v0  ;;  %4967 = vmatmul.mubr.bf16.gmra.mxu0 %v5352_v2  ;;  %v5448_v0 = vld [vmem:[#allocation11 + $0x28] sm:$0xff]   ;;  %v5415_v2 = vld [vmem:[%s6041_s13 + $0xf8] sm:$0xff]  }
 0x125   : > { %4890 = vmatprep.mubr.bf16.mxu1 %v5353_v3  ;;  %4970 = vmatprep.mubr.bf16.mxu0 %v5356_v4  ;;  %v5416_v3 = vld [vmem:[%s6044_s12] sm:$0xff]   ;;  %v5417_v4 = vld [vmem:[%s6044_s12 + $0x8] sm:$0xff]  }
 0x126   : > { %5031 = vmatpush3.bf16.msra.mxu1 %v5364_v1  ;;  %5110 = vmatprep.subr.bf16.mxu0 %v5448_v0  ;;  %v5413_v1 = vld [vmem:[%s6026_s25 + $0xf8] sm:$0xff]   ;;  %s5626_s25 = scalar_lea.vmem %s5625_s6, 8192 }
 0x127   : > { %5032 = vmatprep.subr.bf16.mxu1 %v5373_v5  ;;  %5111 = vmatpush3.bf16.msra.mxu0 %v5448_v0  ;;  %p5628_p6 = scmp.lt.s32.totalorder %s5626_s25, %s5620_s18 }
 0x129   : > { %p5629_p11 = por %p5628_p6, %p5627_p0 }
 0x12a   : > { %5033 = vmatpush3.bf16.msra.mxu1 %v5373_v5  ;;  %v5418_v5 = vld [vmem:[%s6044_s12 + $0x10] sm:$0xff]  }
 0x12b   : > { %5034 = vmatprep.subr.bf16.mxu1 %v5382_v8  ;;  %p5630_p13 = pnand %p5629_p11, %p5623_p5 }
 0x12c   : > { %4891 = vmatmul.mubr.bf16.gmra.mxu1 %v5354_v6  ;;  %4971 = vmatmul.mubr.bf16.gmra.mxu0 %v5357_v7 }
 0x12d   : > { %4894 = vmatprep.mubr.bf16.mxu1 %v5358_v9  ;;  %4974 = vmatprep.mubr.bf16.mxu0 %v5360_v10 }
 0x12e   : > { %5035 = vmatpush3.bf16.msra.mxu1 %v5382_v8  ;;  %v5451_v8 = vld [vmem:[#allocation11 + $0x20] sm:$0xff]  }
 0x12f   : > { %5036 = vmatprep.subr.bf16.mxu1 %v5391_v11  ;;  %5112 = vmatprep.subr.bf16.mxu0 %v5451_v8 }
 0x130   : > { %5113 = vmatpush3.bf16.msra.mxu0 %v5451_v8 }
 0x132   : > { %5037 = vmatpush3.bf16.msra.mxu1 %v5391_v11 }
 0x133   : > { %5038 = vmatprep.subr.bf16.mxu1 %v5400_v14 }
 0x134   : > { %4895 = vmatmul.mubr.bf16.gmra.mxu1 %v5359_v12  ;;  %4975 = vmatmul.mubr.bf16.gmra.mxu0 %v5361_v13  ;;  %v5419_v13 = vld [vmem:[%s6044_s12 + $0x18] sm:$0xff]  }
 0x135   : > { %4898 = vmatprep.mubr.bf16.mxu1 %v5362_v15  ;;  %4978 = vmatprep.mubr.bf16.mxu0 %v5365_v16 }
 0x136   : > { %5039 = vmatpush3.bf16.msra.mxu1 %v5400_v14  ;;  %v5420_v14 = vld [vmem:[%s6044_s12 + $0x20] sm:$0xff]  }
 0x137   : > { %5040 = vmatprep.subr.bf16.mxu1 %v5409_v17 }
 0x13a   : > { %5041 = vmatpush3.bf16.msra.mxu1 %v5409_v17 }
 0x13c   : > { %4899 = vmatmul.mubr.bf16.gmra.mxu1 %v5363_v18  ;;  %4979 = vmatmul.mubr.bf16.gmra.mxu0 %v5366_v19 }
 0x13d   : > { %4902 = vmatprep.mubr.bf16.mxu1 %v5367_v20  ;;  %4982 = vmatprep.mubr.bf16.mxu0 %v5369_v21 }
 0x144   : > { %4903 = vmatmul.mubr.bf16.gmra.mxu1 %v5368_v22  ;;  %4983 = vmatmul.mubr.bf16.gmra.mxu0 %v5370_v23  ;;  %v5421_v23 = vld [vmem:[%s6044_s12 + $0x28] sm:$0xff]  }
 0x145   : > { %4906 = vmatprep.mubr.bf16.mxu1 %v5371_v24  ;;  %4986 = vmatprep.mubr.bf16.mxu0 %v5374_v25  ;;  %v5422_v24 = vld [vmem:[%s6044_s12 + $0x30] sm:$0xff]  }
 0x14c   : > { %4907 = vmatmul.mubr.bf16.gmra.mxu1 %v5372_v26  ;;  %4987 = vmatmul.mubr.bf16.gmra.mxu0 %v5375_v27 }
 0x14d   : > { %4910 = vmatprep.mubr.bf16.mxu1 %v5376_v28  ;;  %4990 = vmatprep.mubr.bf16.mxu0 %v5378_v29  ;;  %v5452_v29 = vld [vmem:[#allocation11 + $0x18] sm:$0xff]  }
 0x14e   : > { %5114 = vmatprep.subr.bf16.mxu0 %v5452_v29 }
 0x14f   : > { %5115 = vmatpush3.bf16.msra.mxu0 %v5452_v29 }
 0x154   : > { %4911 = vmatmul.mubr.bf16.gmra.mxu1 %v5377_v30  ;;  %4991 = vmatmul.mubr.bf16.gmra.mxu0 %v5379_v31 }
 0x155   : > { %4914 = vmatprep.mubr.bf16.mxu1 %v5380_v32  ;;  %4994 = vmatprep.mubr.bf16.mxu0 %v5383_v33 }
 0x15c   : > { %4915 = vmatmul.mubr.bf16.gmra.mxu1 %v5381_v34  ;;  %4995 = vmatmul.mubr.bf16.gmra.mxu0 %v5384_v35  ;;  %v5423_v34 = vld [vmem:[%s6044_s12 + $0x38] sm:$0xff]   ;;  %v5424_v35 = vld [vmem:[%s6044_s12 + $0x40] sm:$0xff]  }
 0x15d   : > { %4918 = vmatprep.mubr.bf16.mxu1 %v5385_v36  ;;  %4998 = vmatprep.mubr.bf16.mxu0 %v5387_v37 }
 0x164   : > { %4919 = vmatmul.mubr.bf16.gmra.mxu1 %v5386_v38  ;;  %4999 = vmatmul.mubr.bf16.gmra.mxu0 %v5388_v39 }
 0x165   : > { %4922 = vmatprep.mubr.bf16.mxu1 %v5389_v40  ;;  %5002 = vmatprep.mubr.bf16.mxu0 %v5392_v41 }
 0x16c   : > { %4923 = vmatmul.mubr.bf16.gmra.mxu1 %v5390_v42  ;;  %5003 = vmatmul.mubr.bf16.gmra.mxu0 %v5393_v43 }
 0x16d   : > { %4926 = vmatprep.mubr.bf16.mxu1 %v5394_v44  ;;  %5006 = vmatprep.mubr.bf16.mxu0 %v5396_v45  ;;  %v5425_v44 = vld [vmem:[%s6044_s12 + $0x48] sm:$0xff]   ;;  %v5426_v45 = vld [vmem:[%s6044_s12 + $0x50] sm:$0xff]  }
 0x174   : > { %4927 = vmatmul.mubr.bf16.gmra.mxu1 %v5395_v47  ;;  %5007 = vmatmul.mubr.bf16.gmra.mxu0 %v5397_v48 }
 0x175   : > { %4930 = vmatprep.mubr.bf16.mxu1 %v5398_v49  ;;  %5010 = vmatprep.mubr.bf16.mxu0 %v5401_v50  ;;  %v5453_v50 = vld [vmem:[#allocation11 + $0x10] sm:$0xff]  }
 0x176   : > { %5116 = vmatprep.subr.bf16.mxu0 %v5453_v50 }
 0x177   : > { %5117 = vmatpush3.bf16.msra.mxu0 %v5453_v50 }
 0x17c   : > { %4931 = vmatmul.mubr.bf16.gmra.mxu1 %v5399_v51  ;;  %5011 = vmatmul.mubr.bf16.gmra.mxu0 %v5402_v52 }
 0x17d   : > { %4934 = vmatprep.mubr.bf16.mxu1 %v5403_v53  ;;  %5014 = vmatprep.mubr.bf16.mxu0 %v5405_v54 }
 0x184   : > { %4935 = vmatmul.mubr.bf16.gmra.mxu1 %v5404_v56  ;;  %5015 = vmatmul.mubr.bf16.gmra.mxu0 %v5406_v57  ;;  %v5428_v56 = vld [vmem:[%s6044_s12 + $0x60] sm:$0xff]  }
 0x185   : > { %4938 = vmatprep.mubr.bf16.mxu1 %v5407_v58  ;;  %5018 = vmatprep.mubr.bf16.mxu0 %v5410_v59 }
 0x18c   : > { %4939 = vmatmul.mubr.bf16.gmra.mxu1 %v5408_v60  ;;  %5019 = vmatmul.mubr.bf16.gmra.mxu0 %v5411_v61 }
 0x18d   : > { %4942 = vmatprep.mubr.bf16.mxu1 %v5412_v62  ;;  %5022 = vmatprep.mubr.bf16.mxu0 %v5414_v63 }
 0x194   : > { %4943 = vmatmul.mubr.bf16.gmra.mxu1 %v5413_v1  ;;  %5023 = vmatmul.mubr.bf16.gmra.mxu0 %v5415_v2  ;;  %v5429_v1 = vld [vmem:[%s6044_s12 + $0x68] sm:$0xff]   ;;  %v5430_v2 = vld [vmem:[%s6044_s12 + $0x70] sm:$0xff]  }
 0x195   : > { %5042 = vmatprep.mubr.bf16.mxu1 %v5416_v3 }
 0x19c   : > { %v6157_v6 = vpop.f32.mrf.mxu1  ;;  %5043 = vmatmul.mubr.bf16.vlgmr.msra.gmra.mxu1 %v5417_v4  ;;  %v6159_v7 = vpop.f32.mrf.mxu0 }
 0x19d   : > { %7023 = vst [vmem:[#allocation25_spill] sm:$0xff] %v6157_v6  ;;  %5046 = vmatprep.mubr.bf16.mxu1 %v5418_v5 }
 0x19e   : > { %v6161_v9 = vpop.f32.mrf.mxu1  ;;  %v6163_v10 = vpop.f32.mrf.mxu0 }
 0x19f   : > { %7024 = vst [vmem:[#allocation26_spill] sm:$0xff] %v6161_v9 }
 0x1a0   : > { %v6165_v11 = vpop.f32.mrf.mxu1  ;;  %v6167_v12 = vpop.f32.mrf.mxu0 }
 0x1a1   : > { %7025 = vst [vmem:[#allocation27_spill] sm:$0xff] %v6165_v11 }
 0x1a2   : > { %v6171_v15 = vpop.f32.mrf.mxu1  ;;  %v6173_v16 = vpop.f32.mrf.mxu0 }
 0x1a3   : > { %7026 = vst [vmem:[#allocation28_spill] sm:$0xff] %v6171_v15 }
 0x1a4   : > { %v6175_v17 = vpop.f32.mrf.mxu1  ;;  %5047 = vmatmul.mubr.bf16.gmra.mxu1 %v5419_v13  ;;  %v6177_v18 = vpop.f32.mrf.mxu0  ;;  %v5454_v13 = vld [vmem:[#allocation11 + $0x8] sm:$0xff]  }
 0x1a5   : > { %7027 = vst [vmem:[#allocation29_spill] sm:$0xff] %v6175_v17  ;;  %5050 = vmatprep.mubr.bf16.mxu1 %v5420_v14  ;;  %5118 = vmatprep.subr.bf16.mxu0 %v5454_v13 }
 0x1a6   : > { %v6179_v19 = vpop.f32.mrf.mxu1  ;;  %v6181_v20 = vpop.f32.mrf.mxu0  ;;  %5119 = vmatpush3.bf16.msra.mxu0 %v5454_v13  ;;  %v5433_v13 = vld [vmem:[%s6044_s12 + $0x88] sm:$0xff]  }
 0x1a7   : > { %7028 = vst [vmem:[#allocation30_spill] sm:$0xff] %v6179_v19  ;;  %v5449_v19 = vld [vmem:[%s6044_s12 + $0xf0] sm:$0xff]  }
 0x1a8   : > { %v6183_v21 = vpop.f32.mrf.mxu1  ;;  %v6185_v22 = vpop.f32.mrf.mxu0 }
 0x1a9   : > { %7029 = vst [vmem:[#allocation31_spill] sm:$0xff] %v6183_v21 }
 0x1aa   : > { %v6189_v25 = vpop.f32.mrf.mxu1  ;;  %v6191_v26 = vpop.f32.mrf.mxu0 }
 0x1ab   : > { %7030 = vst [vmem:[#allocation32_spill] sm:$0xff] %v6189_v25 }
 0x1ac   : > { %v6193_v27 = vpop.f32.mrf.mxu1  ;;  %5051 = vmatmul.mubr.bf16.gmra.mxu1 %v5421_v23  ;;  %v6195_v28 = vpop.f32.mrf.mxu0 }
 0x1ad   : > { %7031 = vst [vmem:[#allocation33_spill] sm:$0xff] %v6193_v27  ;;  %5054 = vmatprep.mubr.bf16.mxu1 %v5422_v24  ;;  %v5446_v27 = vld [vmem:[%s6044_s12 + $0xe0] sm:$0xff]  }
 0x1ae   : > { %v6197_v30 = vpop.f32.mrf.mxu1  ;;  %v6199_v31 = vpop.f32.mrf.mxu0 }
 0x1af   : > { %7032 = vst [vmem:[#allocation34_spill] sm:$0xff] %v6197_v30 }
 0x1b0   : > { %v6201_v32 = vpop.f32.mrf.mxu1  ;;  %v6203_v33 = vpop.f32.mrf.mxu0 }
 0x1b1   : > { %7033 = vst [vmem:[#allocation35_spill] sm:$0xff] %v6201_v32 }
 0x1b2   : > { %v6207_v36 = vpop.f32.mrf.mxu1  ;;  %v6209_v37 = vpop.f32.mrf.mxu0 }
 0x1b3   : > { %7034 = vst [vmem:[#allocation36_spill] sm:$0xff] %v6207_v36  ;;  %v5444_v36 = vld [vmem:[%s6044_s12 + $0xd0] sm:$0xff]  }
 0x1b4   : > { %v6211_v38 = vpop.f32.mrf.mxu1  ;;  %5055 = vmatmul.mubr.bf16.gmra.mxu1 %v5423_v34  ;;  %v6213_v39 = vpop.f32.mrf.mxu0  ;;  %v5431_v34 = vld [vmem:[%s6044_s12 + $0x78] sm:$0xff]  }
 0x1b5   : > { %7035 = vst [vmem:[#allocation37_spill] sm:$0xff] %v6211_v38  ;;  %5058 = vmatprep.mubr.bf16.mxu1 %v5424_v35  ;;  %v5432_v35 = vld [vmem:[%s6044_s12 + $0x80] sm:$0xff]  }
 0x1b6   : > { %v6215_v40 = vpop.f32.mrf.mxu1  ;;  %v6217_v41 = vpop.f32.mrf.mxu0 }
 0x1b7   : > { %7036 = vst [vmem:[#allocation38_spill] sm:$0xff] %v6215_v40 }
 0x1b8   : > { %v6219_v42 = vpop.f32.mrf.mxu1  ;;  %v6221_v43 = vpop.f32.mrf.mxu0 }
 0x1b9   : > { %7037 = vst [vmem:[#allocation39_spill] sm:$0xff] %v6219_v42  ;;  %v5441_v42 = vld [vmem:[%s6044_s12 + $0xc0] sm:$0xff]  }
 0x1ba   : > { %v6225_v46 = vpop.f32.mrf.mxu1  ;;  %v6227_v47 = vpop.f32.mrf.mxu0 }
 0x1bb   : > { %7038 = vst [vmem:[#allocation40_spill] sm:$0xff] %v6225_v46 }
 0x1bc   : > { %v6229_v48 = vpop.f32.mrf.mxu1  ;;  %5059 = vmatmul.mubr.bf16.gmra.mxu1 %v5425_v44  ;;  %v6231_v49 = vpop.f32.mrf.mxu0 }
 0x1bd   : > { %7039 = vst [vmem:[#allocation41_spill] sm:$0xff] %v6229_v48  ;;  %5062 = vmatprep.mubr.bf16.mxu1 %v5426_v45  ;;  %v5439_v48 = vld [vmem:[%s6044_s12 + $0xb0] sm:$0xff]  }
 0x1be   : > { %v6233_v51 = vpop.f32.mrf.mxu1  ;;  %v6235_v52 = vpop.f32.mrf.mxu0 }
 0x1bf   : > { %7040 = vst [vmem:[#allocation42_spill] sm:$0xff] %v6233_v51 }
 0x1c0   : > { %v6237_v53 = vpop.f32.mrf.mxu1  ;;  %v6239_v54 = vpop.f32.mrf.mxu0 }
 0x1c1   : > { %7041 = vst [vmem:[#allocation43_spill] sm:$0xff] %v6237_v53  ;;  %v5437_v53 = vld [vmem:[%s6044_s12 + $0xa8] sm:$0xff]  }
 0x1c2   : > { %v6243_v57 = vpop.f32.mrf.mxu1  ;;  %v6245_v58 = vpop.f32.mrf.mxu0 }
 0x1c3   : > { %7042 = vst [vmem:[#allocation44_spill] sm:$0xff] %v6243_v57 }
 0x1c4   : > { %v6247_v59 = vpop.f32.mrf.mxu1  ;;  %5063 = vmatmul.mubr.bf16.gmra.mxu1 %v5427_v55  ;;  %v6249_v60 = vpop.f32.mrf.mxu0 }
 0x1c5   : > { %7043 = vst [vmem:[#allocation45_spill] sm:$0xff] %v6247_v59  ;;  %5066 = vmatprep.mubr.bf16.mxu1 %v5428_v56  ;;  %v5436_v59 = vld [vmem:[%s6044_s12 + $0xa0] sm:$0xff]  }
 0x1c6   : > { %v6251_v61 = vpop.f32.mrf.mxu1  ;;  %v6253_v62 = vpop.f32.mrf.mxu0 }
 0x1c7   : > { %7044 = vst [vmem:[#allocation46_spill] sm:$0xff] %v6251_v61  ;;  %v5435_v61 = vld [vmem:[%s6044_s12 + $0x98] sm:$0xff]  }
 0x1c8   : > { %v6255_v63 = vpop.f32.mrf.mxu1  ;;  %v6257_v0 = vpop.f32.mrf.mxu0 }
 0x1c9   : > { %7045 = vst [vmem:[#allocation47_spill] sm:$0xff] %v6255_v63 }
 0x1ca   : > { %v6261_v3 = vpop.f32.mrf.mxu1  ;;  %v6263_v4 = vpop.f32.mrf.mxu0 }
 0x1cb   : > { %7046 = vst [vmem:[#allocation48_spill] sm:$0xff] %v6261_v3 }
 0x1cc   : > { %v6265_v5 = vpop.f32.mrf.mxu1  ;;  %5067 = vmatmul.mubr.bf16.gmra.mxu1 %v5429_v1  ;;  %v6267_v8 = vpop.f32.mrf.mxu0 }
 0x1cd   : > { %7047 = vst [vmem:[#allocation49_spill] sm:$0xff] %v6265_v5  ;;  %5070 = vmatprep.mubr.bf16.mxu1 %v5430_v2 }
 0x1ce   : > { %v6269_v14 = vpop.f32.mrf.mxu1  ;;  %v6271_v23 = vpop.f32.mrf.mxu0 }
 0x1cf   : > { %7048 = vst [vmem:[#allocation50_spill] sm:$0xff] %v6269_v14 }
 0x1d0   : > { %v6273_v24 = vpop.f32.mrf.mxu1  ;;  %v6275_v29 = vpop.f32.mrf.mxu0 }
 0x1d1   : > { %7049 = vst [vmem:[#allocation51_spill] sm:$0xff] %v6273_v24 }
 0x1d2   : > { %v6279_v44 = vpop.f32.mrf.mxu1  ;;  %v6281_v45 = vpop.f32.mrf.mxu0 }
 0x1d3   : > { %7050 = vst [vmem:[#allocation52_spill] sm:$0xff] %v6279_v44  ;;  %7051 = vst [vmem:[#allocation53_spill] sm:$0xff] %v6281_v45  ;;  %v5434_v44 = vld [vmem:[%s6044_s12 + $0x90] sm:$0xff]  }
 0x1d4   : > { %v6283_v50 = vpop.f32.mrf.mxu1  ;;  %5071 = vmatmul.mubr.bf16.gmra.mxu1 %v5431_v34  ;;  %v6285_v55 = vpop.f32.mrf.mxu0 }
 0x1d5   : > { %7052 = vst [vmem:[#allocation54_spill] sm:$0xff] %v6283_v50  ;;  %5074 = vmatprep.mubr.bf16.mxu1 %v5432_v35 }
 0x1d6   : > { %v6287_v56 = vpop.f32.mrf.mxu1  ;;  %v6289_v1 = vpop.f32.mrf.mxu0 }
 0x1d7   : > { %7053 = vst [vmem:[#allocation55_spill] sm:$0xff] %v6287_v56 }
 0x1d8   : > { %v6291_v2 = vpop.f32.mrf.mxu1  ;;  %v6293_v24 = vpop.f32.mrf.mxu0 }
 0x1d9   : > { %7054 = vst [vmem:[#allocation56_spill] sm:$0xff] %v6291_v2 }
 0x1da   : > { %v6297_v14 = vpop.f32.mrf.mxu1  ;;  %v6299_v5 = vpop.f32.mrf.mxu0 }
 0x1db   : > { %7055 = vst [vmem:[#allocation57_spill] sm:$0xff] %v6297_v14  ;;  %7056 = vst [vmem:[#allocation58_spill] sm:$0xff] %v6299_v5 }
 0x1dc   : > { %v4884_v34 = vpop.f32.mrf.mxu1  ;;  %5075 = vmatmul.mubr.bf16.gmra.mxu1 %v5433_v13  ;;  %v6301_v50 = vpop.f32.mrf.mxu0  ;;  %v5455_v13 = vld [vmem:[#allocation11] sm:$0xff]  }
 0x1dd   : > { %v6304_v35 = vadd.f32 %v4884_v34, %v6159_v7  ;;  %5078 = vmatprep.mubr.bf16.mxu1 %v5434_v44  ;;  %5120 = vmatprep.subr.bf16.mxu0 %v5455_v13 }
 0x1de   : > { %v1440_v56 = vpop.f32.mrf.mxu1  ;;  %v6306_v3 = vpop.f32.mrf.mxu0  ;;  %5121 = vmatpush3.bf16.msra.mxu0 %v5455_v13 }
 0x1df   : > { %v6309_v2 = vadd.f32 %v1440_v56, %v6163_v10 }
 0x1e0   : > { %v4885_v63 = vpop.f32.mrf.mxu1  ;;  %v6318_v7 = vpop.f32.mrf.mxu0 }
 0x1e1   : > { %v6313_v14 = vadd.f32 %v4885_v63, %v6167_v12 }
 0x1e2   : > { %v6316_v57 = vpop.f32.mrf.mxu1  ;;  %v6323_v56 = vpop.f32.mrf.mxu0 }
 0x1e4   : > { %v4888_v44 = vpop.f32.mrf.mxu1  ;;  %5079 = vmatmul.mubr.bf16.gmra.mxu1 %v5435_v61  ;;  %v6333_v61 = vpop.f32.mrf.mxu0 }
 0x1e5   : > { %v6321_v10 = vadd.f32 %v4888_v44, %v6177_v18  ;;  %5082 = vmatprep.mubr.bf16.mxu1 %v5436_v59 }
 0x1e6   : > { %v1456_v34 = vpop.f32.mrf.mxu1  ;;  %v6340_v44 = vpop.f32.mrf.mxu0 }
 0x1e7   : > { %v6326_v12 = vadd.f32 %v1456_v34, %v6181_v20 }
 0x1e8   : > { %v4889_v63 = vpop.f32.mrf.mxu1  ;;  %v6350_v40 = vpop.f32.mrf.mxu0 }
 0x1e9   : > { %v6330_v51 = vadd.f32 %v4889_v63, %v6185_v22  ;;  %v5440_v63 = vld [vmem:[%s6044_s12 + $0xb8] sm:$0xff]  }
 0x1ea   : > { %v6335_v13 = vpop.f32.mrf.mxu1 }
 0x1ec   : > { %v4892_v18 = vpop.f32.mrf.mxu1  ;;  %5083 = vmatmul.mubr.bf16.gmra.mxu1 %v5437_v53 }
 0x1ed   : > { %v6338_v59 = vadd.f32 %v4892_v18, %v6195_v28  ;;  %5086 = vmatprep.mubr.bf16.mxu1 %v5439_v48  ;;  %v6357_v18 = vpop.f32.mrf.mxu0 }
 0x1ee   : > { %v1472_v20 = vpop.f32.mrf.mxu1 }
 0x1ef   : > { %v6343_v34 = vadd.f32 %v1472_v20, %v6199_v31  ;;  %v6367_v32 = vpop.f32.mrf.mxu0 }
 0x1f0   : > { %v4893_v22 = vpop.f32.mrf.mxu1 }
 0x1f1   : > { %v6347_v46 = vadd.f32 %v4893_v22, %v6203_v33  ;;  %v5442_v22 = vld [vmem:[%s6044_s12 + $0xc8] sm:$0xff]  }
 0x1f2   : > { %v6352_v53 = vpop.f32.mrf.mxu1 }
 0x1f4   : > { %v4896_v28 = vpop.f32.mrf.mxu1  ;;  %5087 = vmatmul.mubr.bf16.gmra.mxu1 %v5440_v63 }
 0x1f5   : > { %v6355_v48 = vadd.f32 %v4896_v28, %v6213_v39  ;;  %5090 = vmatprep.mubr.bf16.mxu1 %v5441_v42  ;;  %v6374_v28 = vpop.f32.mrf.mxu0 }
 0x1f6   : > { %v1488_v31 = vpop.f32.mrf.mxu1 }
 0x1f7   : > { %v6360_v20 = vadd.f32 %v1488_v31, %v6217_v41  ;;  %v6384_v25 = vpop.f32.mrf.mxu0 }
 0x1f8   : > { %v4897_v33 = vpop.f32.mrf.mxu1 }
 0x1f9   : > { %v6364_v38 = vadd.f32 %v4897_v33, %v6221_v43  ;;  %v5445_v33 = vld [vmem:[%s6044_s12 + $0xd8] sm:$0xff]  }
 0x1fa   : > { %v6369_v63 = vpop.f32.mrf.mxu1 }
 0x1fc   : > { %v4900_v39 = vpop.f32.mrf.mxu1  ;;  %5091 = vmatmul.mubr.bf16.gmra.mxu1 %v5442_v22 }
 0x1fd   : > { %v6372_v42 = vadd.f32 %v4900_v39, %v6231_v49  ;;  %5094 = vmatprep.mubr.bf16.mxu1 %v5444_v36  ;;  %v6391_v39 = vpop.f32.mrf.mxu0 }
 0x1fe   : > { %v1504_v41 = vpop.f32.mrf.mxu1 }
 0x1ff   : > { %v6377_v31 = vadd.f32 %v1504_v41, %v6235_v52  ;;  %v6401_v17 = vpop.f32.mrf.mxu0 }
 0x200   : > { %v4901_v43 = vpop.f32.mrf.mxu1 }
 0x201   : > { %v6381_v30 = vadd.f32 %v4901_v43, %v6239_v54  ;;  %v5447_v43 = vld [vmem:[%s6044_s12 + $0xe8] sm:$0xff]  }
 0x202   : > { %v6386_v22 = vpop.f32.mrf.mxu1 }
 0x204   : > { %v4904_v49 = vpop.f32.mrf.mxu1  ;;  %5095 = vmatmul.mubr.bf16.gmra.mxu1 %v5445_v33 }
 0x205   : > { %v6389_v36 = vadd.f32 %v4904_v49, %v6249_v60  ;;  %5098 = vmatprep.mubr.bf16.mxu1 %v5446_v27  ;;  %v6408_v49 = vpop.f32.mrf.mxu0 }
 0x206   : > { %v1520_v52 = vpop.f32.mrf.mxu1 }
 0x207   : > { %v6394_v41 = vadd.f32 %v1520_v52, %v6253_v62  ;;  %v6417_v11 = vpop.f32.mrf.mxu0 }
 0x208   : > { %v4905_v54 = vpop.f32.mrf.mxu1 }
 0x209   : > { %v6398_v21 = vadd.f32 %v4905_v54, %v6257_v0  ;;  %v5450_v0 = vld [vmem:[%s6044_s12 + $0xf8] sm:$0xff]  }
 0x20a   : > { %v6403_v33 = vpop.f32.mrf.mxu1 }
 0x20c   : > { %v4908_v60 = vpop.f32.mrf.mxu1  ;;  %5099 = vmatmul.mubr.bf16.gmra.mxu1 %v5447_v43 }
 0x20d   : > { %v6406_v27 = vadd.f32 %v4908_v60, %v6267_v8  ;;  %5102 = vmatprep.mubr.bf16.mxu1 %v5449_v19  ;;  %v6424_v19 = vpop.f32.mrf.mxu0 }
 0x20e   : > { %v1536_v62 = vpop.f32.mrf.mxu1 }
 0x20f   : > { %7057 = vst [vmem:[#allocation59_spill] sm:$0xff] %v6406_v27  ;;  %v6411_v52 = vadd.f32 %v1536_v62, %v6271_v23 }
 0x210   : > { %v4909_v15 = vpop.f32.mrf.mxu1 }
 0x211   : > { %7058 = vst [vmem:[#allocation60_spill] sm:$0xff] %v6411_v52  ;;  %v6415_v54 = vadd.f32 %v4909_v15, %v6275_v29  ;;  %v6432_v15 = vpop.f32.mrf.mxu0 }
 0x212   : > { %v6419_v9 = vpop.f32.mrf.mxu1 }
 0x213   : > { %7059 = vst [vmem:[#allocation61_spill] sm:$0xff] %v6415_v54  ;;  %7060 = vst [vmem:[#allocation62_spill] sm:$0xff] %v6419_v9 }
 0x214   : > { %v4912_v43 = vpop.f32.mrf.mxu1  ;;  %5103 = vmatmul.mubr.bf16.gmra.mxu1 %v5450_v0  ;;  %v6438_v0 = vpop.f32.mrf.mxu0 }
 0x215   : > { %v6422_v8 = vadd.f32 %v4912_v43, %v6285_v55 }
 0x216   : > { %v1552_v60 = vpop.f32.mrf.mxu1 }
 0x217   : > { %7061 = vst [vmem:[#allocation63_spill] sm:$0xff] %v6422_v8  ;;  %v6427_v23 = vadd.f32 %v1552_v60, %v6289_v1  ;;  %v6444_v8 = vpop.f32.mrf.mxu0 }
 0x218   : > { %v4913_v62 = vpop.f32.mrf.mxu1 }
 0x219   : > { %7062 = vst [vmem:[#allocation64_spill] sm:$0xff] %v6427_v23  ;;  %v6430_v6 = vadd.f32 %v4913_v62, %v6293_v24  ;;  %v6450_v24 = vpop.f32.mrf.mxu0 }
 0x21a   : > { %v6434_v29 = vpop.f32.mrf.mxu1 }
 0x21b   : > { %7063 = vst [vmem:[#allocation65_spill] sm:$0xff] %v6430_v6  ;;  %7064 = vst [vmem:[#allocation66_spill] sm:$0xff] %v6434_v29  ;;  %v6456_v29 = vpop.f32.mrf.mxu0 }
 0x21c   : > { %v6436_v5 = vpop.f32.mrf.mxu1 }
 0x21d   : > { %7065 = vst [vmem:[#allocation67_spill] sm:$0xff] %v6436_v5 }
 0x21e   : > { %v6440_v55 = vpop.f32.mrf.mxu1 }
 0x21f   : > { %7066 = vst [vmem:[#allocation68_spill] sm:$0xff] %v6440_v55  ;;  %v6462_v55 = vpop.f32.mrf.mxu0 }
 0x220   : > { %v6442_v43 = vpop.f32.mrf.mxu1 }
 0x221   : > { %7067 = vst [vmem:[#allocation69_spill] sm:$0xff] %v6442_v43 }
 0x222   : > { %v6446_v1 = vpop.f32.mrf.mxu1 }
 0x223   : > { %7068 = vst [vmem:[#allocation70_spill] sm:$0xff] %v6446_v1  ;;  %v6468_v1 = vpop.f32.mrf.mxu0 }
 0x224   : > { %v6448_v60 = vpop.f32.mrf.mxu1 }
 0x225   : > { %7069 = vst [vmem:[#allocation71_spill] sm:$0xff] %v6448_v60 }
 0x226   : > { %v6452_v62 = vpop.f32.mrf.mxu1 }
 0x227   : > { %7070 = vst [vmem:[#allocation72_spill] sm:$0xff] %v6452_v62  ;;  %v6474_v62 = vpop.f32.mrf.mxu0 }
 0x228   : > { %v6454_v6 = vpop.f32.mrf.mxu1  ;;  %7078 = vst [vmem:[#allocation80_spill] sm:$0xff] %v6474_v62 }
 0x229   : > { %7071 = vst [vmem:[#allocation73_spill] sm:$0xff] %v6454_v6 }
 0x22a   : > { %v6458_v5 = vpop.f32.mrf.mxu1 }
 0x22b   : > { %7072 = vst [vmem:[#allocation74_spill] sm:$0xff] %v6458_v5  ;;  %v6480_v5 = vpop.f32.mrf.mxu0 }
 0x22c   : > { %v6460_v23 = vpop.f32.mrf.mxu1  ;;  %7081 = vst [vmem:[#allocation83_spill] sm:$0xff] %v6480_v5 }
 0x22d   : > { %7073 = vst [vmem:[#allocation75_spill] sm:$0xff] %v6460_v23 }
 0x22e   : > { %v6464_v43 = vpop.f32.mrf.mxu1 }
 0x22f   : > { %7074 = vst [vmem:[#allocation76_spill] sm:$0xff] %v6464_v43  ;;  %v6486_v43 = vpop.f32.mrf.mxu0 }
 0x230   : > { %v6466_v54 = vpop.f32.mrf.mxu1  ;;  %7084 = vst [vmem:[#allocation86_spill] sm:$0xff] %v6486_v43 }
 0x231   : > { %7075 = vst [vmem:[#allocation77_spill] sm:$0xff] %v6466_v54 }
 0x232   : > { %v6470_v60 = vpop.f32.mrf.mxu1 }
 0x233   : > { %7076 = vst [vmem:[#allocation78_spill] sm:$0xff] %v6470_v60  ;;  %v6492_v60 = vpop.f32.mrf.mxu0 }
 0x234   : > { %v6472_v9 = vpop.f32.mrf.mxu1  ;;  %7087 = vst [vmem:[#allocation89_spill] sm:$0xff] %v6492_v60 }
 0x235   : > { %7077 = vst [vmem:[#allocation79_spill] sm:$0xff] %v6472_v9 }
 0x236   : > { %v6476_v6 = vpop.f32.mrf.mxu1 }
 0x237   : > { %7079 = vst [vmem:[#allocation81_spill] sm:$0xff] %v6476_v6  ;;  %v6498_v6 = vpop.f32.mrf.mxu0 }
 0x238   : > { %v6478_v45 = vpop.f32.mrf.mxu1  ;;  %7090 = vst [vmem:[#allocation92_spill] sm:$0xff] %v6498_v6 }
 0x239   : > { %7080 = vst [vmem:[#allocation82_spill] sm:$0xff] %v6478_v45 }
 0x23a   : > { %v6482_v23 = vpop.f32.mrf.mxu1 }
 0x23b   : > { %7082 = vst [vmem:[#allocation84_spill] sm:$0xff] %v6482_v23  ;;  %v6504_v23 = vpop.f32.mrf.mxu0 }
 0x23c   : > { %v6484_v52 = vpop.f32.mrf.mxu1  ;;  %7093 = vst [vmem:[#allocation95_spill] sm:$0xff] %v6504_v23 }
 0x23d   : > { %7083 = vst [vmem:[#allocation85_spill] sm:$0xff] %v6484_v52 }
 0x23e   : > { %v6488_v54 = vpop.f32.mrf.mxu1 }
 0x23f   : > { %7085 = vst [vmem:[#allocation87_spill] sm:$0xff] %v6488_v54  ;;  %v6510_v54 = vpop.f32.mrf.mxu0 }
 0x240   : > { %v6490_v27 = vpop.f32.mrf.mxu1  ;;  %7096 = vst [vmem:[#allocation98_spill] sm:$0xff] %v6510_v54 }
 0x241   : > { %7086 = vst [vmem:[#allocation88_spill] sm:$0xff] %v6490_v27 }
 0x242   : > { %v6494_v9 = vpop.f32.mrf.mxu1 }
 0x243   : > { %7088 = vst [vmem:[#allocation90_spill] sm:$0xff] %v6494_v9  ;;  %v6516_v9 = vpop.f32.mrf.mxu0 }
 0x244   : > { %v6496_v62 = vpop.f32.mrf.mxu1  ;;  %7099 = vst [vmem:[#allocation101_spill] sm:$0xff] %v6516_v9  ;;  %v2305_v9 = vadd.f32 %v6306_v3, %v6309_v2 }
 0x245   : > { %7089 = vst [vmem:[#allocation91_spill] sm:$0xff] %v6496_v62 }
 0x246   : > { %v6500_v45 = vpop.f32.mrf.mxu1 }
 0x247   : > { %7091 = vst [vmem:[#allocation93_spill] sm:$0xff] %v6500_v45  ;;  %v6522_v45 = vpop.f32.mrf.mxu0 }
 0x248   : > { %v6502_v5 = vpop.f32.mrf.mxu1  ;;  %7102 = vst [vmem:[#allocation104_spill] sm:$0xff] %v6522_v45 }
 0x249   : > { %7092 = vst [vmem:[#allocation94_spill] sm:$0xff] %v6502_v5 }
 0x24a   : > { %v6506_v52 = vpop.f32.mrf.mxu1 }
 0x24b   : > { %7094 = vst [vmem:[#allocation96_spill] sm:$0xff] %v6506_v52  ;;  %v6528_v52 = vpop.f32.mrf.mxu0 }
 0x24c   : > { %v6508_v43 = vpop.f32.mrf.mxu1  ;;  %7105 = vst [vmem:[#allocation107_spill] sm:$0xff] %v6528_v52 }
 0x24d   : > { %7095 = vst [vmem:[#allocation97_spill] sm:$0xff] %v6508_v43  ;;  %v6538_v45 = vpop.f32.mrf.mxu0 }
 0x24e   : > { %v6512_v27 = vpop.f32.mrf.mxu1  ;;  %7107 = vst [vmem:[#allocation109_spill] sm:$0xff] %v6538_v45 }
 0x24f   : > { %7097 = vst [vmem:[#allocation99_spill] sm:$0xff] %v6512_v27  ;;  %v2307_v27 = vadd.f32 %v6301_v50, %v6304_v35 }
 0x250   : > { %v6514_v60 = vpop.f32.mrf.mxu1 }
 0x251   : > { %7098 = vst [vmem:[#allocation100_spill] sm:$0xff] %v6514_v60 }
 0x252   : > { %v6518_v62 = vpop.f32.mrf.mxu1 }
 0x253   : > { %7100 = vst [vmem:[#allocation102_spill] sm:$0xff] %v6518_v62 }
 0x254   : > { %v6520_v6 = vpop.f32.mrf.mxu1 }
 0x255   : > { %7101 = vst [vmem:[#allocation103_spill] sm:$0xff] %v6520_v6  ;;  %v1444_v6 = vadd.f32 %v6316_v57, %v6173_v16  ;;  %v6549_v16 = vpop.f32.mrf.mxu0 }
 0x256   : > { %v6524_v5 = vpop.f32.mrf.mxu1 }
 0x257   : > { %7103 = vst [vmem:[#allocation105_spill] sm:$0xff] %v6524_v5  ;;  %v2306_v52 = vadd.f32 %v6323_v56, %v1444_v6  ;;  %v1460_v6 = vadd.f32 %v6335_v13, %v6191_v26 }
 0x258   : > { %v6526_v23 = vpop.f32.mrf.mxu1 }
 0x259   : > { %7104 = vst [vmem:[#allocation106_spill] sm:$0xff] %v6526_v23  ;;  %v6543_v23 = vld [vmem:[%s6965_s5] ss:$0 sm:$0xff] }
 0x25a   : > { %v6530_v43 = vpop.f32.mrf.mxu1 }
 0x25b   : > { %7106 = vst [vmem:[#allocation108_spill] sm:$0xff] %v6530_v43  ;;  %v2308_v43 = vadd.f32 %v6318_v7, %v6313_v14 }
 0x25c   : > { %v5044_v60 = vpop.f32.mrf.mxu1 }
 0x25d   : > { %v2981_v62 = vadd.f32 %v5044_v60, %v2307_v27  ;;  %v2311_v27 = vadd.f32 %v6333_v61, %v6321_v10  ;;  %v2312_v10 = vadd.f32 %v6350_v40, %v6330_v51  ;;  %v6562_v61 = vpop.f32.mrf.mxu0  ;;  %v2315_v40 = vadd.f32 %v6367_v32, %v6338_v59 }
 0x25e   : > { %v2724_v5 = vpop.f32.mrf.mxu1  ;;  %v2316_v32 = vadd.f32 %v6384_v25, %v6347_v46  ;;  %v2319_v25 = vadd.f32 %v6401_v17, %v6355_v48  ;;  %v2320_v17 = vadd.f32 %v6417_v11, %v6364_v38  ;;  %v2323_v11 = vadd.f32 %v6432_v15, %v6372_v42 }
 0x25f   : > { %v2979_v50 = vadd.f32 %v2724_v5, %v2305_v9  ;;  %v3052_v3 = vadd.f32 %v6543_v23, %v2981_v62  ;;  %v2309_v9 = vadd.f32 %v6340_v44, %v6326_v12  ;;  %v2310_v44 = vadd.f32 %v6357_v18, %v1460_v6 }
 0x260   : > { %v5045_v35 = vpop.f32.mrf.mxu1  ;;  %v1476_v18 = vadd.f32 %v6352_v53, %v6209_v37  ;;  %v2324_v42 = vadd.f32 %v6444_v8, %v6381_v30  ;;  %v2327_v30 = vadd.f32 %v6456_v29, %v6389_v36  ;;  %v2328_v36 = vadd.f32 %v6468_v1, %v6398_v21 }
 0x261   : > { %v2982_v2 = vadd.f32 %v5045_v35, %v2308_v43  ;;  %v3050_v60 = vadd.f32 %v6543_v23, %v2979_v50  ;;  %v3116_v14 = vmax.f32 %v3052_v3, 0.0  ;;  %v6566_v3 = vpop.f32.mrf.mxu0 }
 0x262   : > { %v2727_v57 = vpop.f32.mrf.mxu1  ;;  %v2314_v37 = vadd.f32 %v6391_v39, %v1476_v18  ;;  %v1492_v39 = vadd.f32 %v6369_v63, %v6227_v47 }
 0x263   : > { %v3053_v45 = vadd.f32 %v6543_v23, %v2982_v2  ;;  %v2980_v54 = vadd.f32 %v2727_v57, %v2306_v52  ;;  %v3114_v50 = vmax.f32 %v3050_v60, 0.0  ;;  %v2313_v60 = vadd.f32 %v6374_v28, %v6343_v34  ;;  %v6579_v59 = vpop.f32.mrf.mxu0 }
 0x264   : > { %v5048_v5 = vpop.f32.mrf.mxu1  ;;  %v2318_v47 = vadd.f32 %v6424_v19, %v1492_v39  ;;  %v1508_v19 = vadd.f32 %v6386_v22, %v6245_v58  ;;  %v2325_v39 = vadd.f32 %v6462_v55, %v6394_v41 }
 0x265   : > { %v3117_v7 = vmax.f32 %v3053_v45, 0.0  ;;  %v3051_v56 = vadd.f32 %v6543_v23, %v2980_v54  ;;  %v2985_v43 = vadd.f32 %v5048_v5, %v2311_v27 }
 0x266   : > { %v2740_v62 = vpop.f32.mrf.mxu1  ;;  %v2322_v58 = vadd.f32 %v6450_v24, %v1508_v19  ;;  %v1524_v24 = vadd.f32 %v6403_v33, %v6263_v4  ;;  %v7114_v19 = vld [vmem:[#allocation62_spill] sm:$0xff] }
 0x267   : > { %v3179_v52 = vpack.c.bf16 %v3117_v7, %v3116_v14  ;;  %v3115_v35 = vmax.f32 %v3051_v56, 0.0  ;;  %v2983_v2 = vadd.f32 %v2740_v62, %v2309_v9  ;;  %v3056_v26 = vadd.f32 %v6543_v23, %v2985_v43 }
 0x268   : > { %v5049_v12 = vpop.f32.mrf.mxu1 }
 0x269   : > { %v2986_v13 = vadd.f32 %v5049_v12, %v2312_v10  ;;  %v3178_v45 = vpack.c.bf16 %v3115_v35, %v3114_v50  ;;  %v3054_v51 = vadd.f32 %v6543_v23, %v2983_v2  ;;  %v3120_v6 = vmax.f32 %v3056_v26, 0.0  ;;  %v6583_v35 = vpop.f32.mrf.mxu0 }
 0x26a   : > { %v2743_v54 = vpop.f32.mrf.mxu1  ;;  %v2317_v26 = vadd.f32 %v6408_v49, %v6360_v20 }
 0x26b   : > { %v3057_v57 = vadd.f32 %v6543_v23, %v2986_v13  ;;  %v2984_v27 = vadd.f32 %v2743_v54, %v2310_v44  ;;  %5122 = vmatprep.mubr.bf16.mxu0 %v3178_v45  ;;  %v3118_v43 = vmax.f32 %v3054_v51, 0.0  ;;  %v6596_v48 = vpop.f32.mrf.mxu0 }
 0x26c   : > { %v5052_v9 = vpop.f32.mrf.mxu1  ;;  %5123 = vmatmul.mubr.bf16.vlgmr.msra.gmra.mxu0 %v3179_v52 }
 0x26d   : > { %v3121_v5 = vmax.f32 %v3057_v57, 0.0  ;;  %v3055_v14 = vadd.f32 %v6543_v23, %v2984_v27  ;;  %v2989_v7 = vadd.f32 %v5052_v9, %v2315_v40 }
 0x26e   : > { %v2756_v56 = vpop.f32.mrf.mxu1 }
 0x26f   : > { %v3119_v10 = vmax.f32 %v3055_v14, 0.0  ;;  %v2987_v62 = vadd.f32 %v2756_v56, %v2313_v60  ;;  %v3181_v34 = vpack.c.bf16 %v3121_v5, %v3120_v6  ;;  %v3060_v53 = vadd.f32 %v6543_v23, %v2989_v7  ;;  %v6600_v5 = vpop.f32.mrf.mxu0 }
 0x270   : > { %v5053_v28 = vpop.f32.mrf.mxu1  ;;  %v2321_v56 = vadd.f32 %v6438_v0, %v6377_v31 }
 0x271   : > { %v2990_v50 = vadd.f32 %v5053_v28, %v2316_v32  ;;  %v3180_v52 = vpack.c.bf16 %v3119_v10, %v3118_v43  ;;  %v3058_v46 = vadd.f32 %v6543_v23, %v2987_v62  ;;  %v3124_v45 = vmax.f32 %v3060_v53, 0.0  ;;  %v6613_v15 = vpop.f32.mrf.mxu0 }
 0x272   : > { %v2759_v2 = vpop.f32.mrf.mxu1 }
 0x273   : > { %v3061_v12 = vadd.f32 %v6543_v23, %v2990_v50  ;;  %v2988_v44 = vadd.f32 %v2759_v2, %v2314_v37  ;;  %5126 = vmatprep.mubr.bf16.mxu0 %v3180_v52  ;;  %v3122_v27 = vmax.f32 %v3058_v46, 0.0  ;;  %v6617_v46 = vpop.f32.mrf.mxu0 }
 0x274   : > { %v5056_v13 = vpop.f32.mrf.mxu1  ;;  %5127 = vmatmul.mubr.bf16.gmra.mxu0 %v3181_v34 }
 0x275   : > { %v3125_v54 = vmax.f32 %v3061_v12, 0.0  ;;  %v3059_v40 = vadd.f32 %v6543_v23, %v2988_v44  ;;  %v2993_v51 = vadd.f32 %v5056_v13, %v2319_v25  ;;  %v6630_v29 = vpop.f32.mrf.mxu0 }
 0x276   : > { %v2772_v57 = vpop.f32.mrf.mxu1 }
 0x277   : > { %v3123_v60 = vmax.f32 %v3059_v40, 0.0  ;;  %v2991_v18 = vadd.f32 %v2772_v57, %v2317_v26  ;;  %v3183_v20 = vpack.c.bf16 %v3125_v54, %v3124_v45  ;;  %v3064_v63 = vadd.f32 %v6543_v23, %v2993_v51 }
 0x278   : > { %v5057_v49 = vpop.f32.mrf.mxu1 }
 0x279   : > { %v2994_v9 = vadd.f32 %v5057_v49, %v2320_v17  ;;  %v3182_v6 = vpack.c.bf16 %v3123_v60, %v3122_v27  ;;  %v3062_v38 = vadd.f32 %v6543_v23, %v2991_v18  ;;  %v3128_v10 = vmax.f32 %v3064_v63, 0.0  ;;  %v7108_v18 = vld [vmem:[#allocation80_spill] sm:$0xff] }
 0x27a   : > { %v2775_v14 = vpop.f32.mrf.mxu1  ;;  %v2326_v4 = vadd.f32 %v7108_v18, %v1524_v24 }
 0x27b   : > { %v3065_v7 = vadd.f32 %v6543_v23, %v2994_v9  ;;  %v2992_v32 = vadd.f32 %v2775_v14, %v2318_v47  ;;  %5130 = vmatprep.mubr.bf16.mxu0 %v3182_v6  ;;  %v3126_v53 = vmax.f32 %v3062_v38, 0.0  ;;  %v6634_v47 = vpop.f32.mrf.mxu0  ;;  %v7109_v9 = vld [vmem:[#allocation59_spill] sm:$0xff]  ;;  %v7111_v38 = vld [vmem:[#allocation60_spill] sm:$0xff] }
 0x27c   : > { %v5060_v43 = vpop.f32.mrf.mxu1  ;;  %5131 = vmatmul.mubr.bf16.gmra.mxu0 %v3183_v20  ;;  %v7110_v6 = vld [vmem:[#allocation83_spill] sm:$0xff] }
 0x27d   : > { %v3129_v62 = vmax.f32 %v3065_v7, 0.0  ;;  %v3063_v34 = vadd.f32 %v6543_v23, %v2992_v32  ;;  %v2997_v28 = vadd.f32 %v5060_v43, %v2323_v11  ;;  %v2331_v21 = vadd.f32 %v7110_v6, %v7109_v9  ;;  %v7112_v7 = vld [vmem:[#allocation86_spill] sm:$0xff]  ;;  %v7125_v9 = vld [vmem:[#allocation101_spill] sm:$0xff] }
 0x27e   : > { %v2788_v37 = vpop.f32.mrf.mxu1  ;;  %v2329_v32 = vadd.f32 %v7112_v7, %v7111_v38 }
 0x27f   : > { %v3127_v50 = vmax.f32 %v3063_v34, 0.0  ;;  %v2995_v52 = vadd.f32 %v2788_v37, %v2321_v56  ;;  %v3185_v31 = vpack.c.bf16 %v3129_v62, %v3128_v10  ;;  %v3068_v22 = vadd.f32 %v6543_v23, %v2997_v28  ;;  %v7113_v56 = vld [vmem:[#allocation53_spill] sm:$0xff] }
 0x280   : > { %v5061_v0 = vpop.f32.mrf.mxu1  ;;  %v1540_v43 = vadd.f32 %v7114_v19, %v7113_v56  ;;  %v7115_v37 = vld [vmem:[#allocation61_spill] sm:$0xff] }
 0x281   : > { %v2998_v2 = vadd.f32 %v5061_v0, %v2324_v42  ;;  %v3184_v25 = vpack.c.bf16 %v3127_v50, %v3126_v53  ;;  %v3066_v8 = vadd.f32 %v6543_v23, %v2995_v52  ;;  %v3132_v45 = vmax.f32 %v3068_v22, 0.0  ;;  %v7116_v53 = vld [vmem:[#allocation89_spill] sm:$0xff]  ;;  %v6647_v52 = vpop.f32.mrf.mxu0 }
 0x282   : > { %v2791_v12 = vpop.f32.mrf.mxu1  ;;  %v2332_v50 = vadd.f32 %v7116_v53, %v7115_v37 }
 0x283   : > { %v3069_v44 = vadd.f32 %v6543_v23, %v2998_v2  ;;  %v2996_v26 = vadd.f32 %v2791_v12, %v2322_v58  ;;  %5134 = vmatprep.mubr.bf16.mxu0 %v3184_v25  ;;  %v3130_v57 = vmax.f32 %v3066_v8, 0.0  ;;  %v7117_v12 = vld [vmem:[#allocation92_spill] sm:$0xff] }
 0x284   : > { %v5064_v13 = vpop.f32.mrf.mxu1  ;;  %5135 = vmatmul.mubr.bf16.gmra.mxu0 %v3185_v31 }
 0x285   : > { %v3133_v54 = vmax.f32 %v3069_v44, 0.0  ;;  %v3067_v40 = vadd.f32 %v6543_v23, %v2996_v26  ;;  %v3001_v51 = vadd.f32 %v5064_v13, %v2327_v30  ;;  %v2330_v30 = vadd.f32 %v7117_v12, %v1540_v43  ;;  %v7118_v13 = vld [vmem:[#allocation63_spill] sm:$0xff]  ;;  %v7128_v43 = vld [vmem:[#allocation26_spill] sm:$0xff] }
 0x286   : > { %v2804_v17 = vpop.f32.mrf.mxu1 }
 0x287   : > { %v3187_v27 = vpack.c.bf16 %v3133_v54, %v3132_v45  ;;  %v3131_v60 = vmax.f32 %v3067_v40, 0.0  ;;  %v2999_v41 = vadd.f32 %v2804_v17, %v2325_v39  ;;  %v3072_v33 = vadd.f32 %v6543_v23, %v3001_v51  ;;  %v6651_v39 = vpop.f32.mrf.mxu0  ;;  %v7119_v45 = vld [vmem:[#allocation95_spill] sm:$0xff]  ;;  %v7120_v17 = vld [vmem:[#allocation64_spill] sm:$0xff] }
 0x288   : > { %v5065_v55 = vpop.f32.mrf.mxu1  ;;  %v2335_v54 = vadd.f32 %v7119_v45, %v7118_v13  ;;  %v7135_v13 = vld [vmem:[#allocation28_spill] sm:$0xff]  ;;  %v7136_v45 = vld [vmem:[#allocation70_spill] sm:$0xff] }
 0x289   : > { %v3002_v20 = vadd.f32 %v5065_v55, %v2328_v36  ;;  %v3186_v49 = vpack.c.bf16 %v3131_v60, %v3130_v57  ;;  %v3070_v1 = vadd.f32 %v6543_v23, %v2999_v41  ;;  %v3136_v62 = vmax.f32 %v3072_v33, 0.0  ;;  %v7121_v57 = vld [vmem:[#allocation98_spill] sm:$0xff] }
 0x28a   : > { %v2807_v63 = vpop.f32.mrf.mxu1  ;;  %v7122_v60 = vld [vmem:[#allocation58_spill] sm:$0xff] }
 0x28b   : > { %v3073_v14 = vadd.f32 %v6543_v23, %v3002_v20  ;;  %v3000_v11 = vadd.f32 %v2807_v63, %v2326_v4  ;;  %5138 = vmatprep.mubr.bf16.mxu0 %v3186_v49  ;;  %v3134_v0 = vmax.f32 %v3070_v1, 0.0  ;;  %v7123_v41 = vld [vmem:[#allocation66_spill] sm:$0xff]  ;;  %v7124_v63 = vld [vmem:[#allocation65_spill] sm:$0xff]  ;;  %v7127_v1 = vld [vmem:[#allocation67_spill] sm:$0xff] }
 0x28c   : > { %v5068_v10 = vpop.f32.mrf.mxu1  ;;  %5139 = vmatmul.mubr.bf16.gmra.mxu0 %v3187_v27  ;;  %v2333_v27 = vadd.f32 %v7121_v57, %v7120_v17  ;;  %v1556_v55 = vadd.f32 %v7123_v41, %v7122_v60  ;;  %v2336_v6 = vadd.f32 %v7125_v9, %v7124_v63  ;;  %v7137_v60 = vld [vmem:[#allocation29_spill] sm:$0xff]  ;;  %v7138_v41 = vld [vmem:[#allocation71_spill] sm:$0xff]  ;;  %v7139_v9 = vld [vmem:[#allocation30_spill] sm:$0xff] }
 0x28d   : > { %v3137_v34 = vmax.f32 %v3073_v14, 0.0  ;;  %v3071_v28 = vadd.f32 %v6543_v23, %v3000_v11  ;;  %v3005_v42 = vadd.f32 %v5068_v10, %v2331_v21  ;;  %v7126_v21 = vld [vmem:[#allocation25_spill] sm:$0xff]  ;;  %v6666_v11 = vpop.f32.mrf.mxu0  ;;  %v7129_v10 = vld [vmem:[#allocation68_spill] sm:$0xff] }
 0x28e   : > { %v2820_v31 = vpop.f32.mrf.mxu1  ;;  %v1577_v14 = vadd.f32 %v7127_v1, %v7126_v21 }
 0x28f   : > { %v3189_v58 = vpack.c.bf16 %v3137_v34, %v3136_v62  ;;  %v3135_v22 = vmax.f32 %v3071_v28, 0.0  ;;  %v3003_v2 = vadd.f32 %v2820_v31, %v2329_v32  ;;  %v3076_v8 = vadd.f32 %v6543_v23, %v3005_v42  ;;  %v7130_v28 = vld [vmem:[#allocation104_spill] sm:$0xff]  ;;  %v7131_v31 = vld [vmem:[#allocation27_spill] sm:$0xff] }
 0x290   : > { %v5069_v25 = vpop.f32.mrf.mxu1  ;;  %v1569_v62 = vadd.f32 %v7129_v10, %v7128_v43  ;;  %v2334_v42 = vadd.f32 %v7130_v28, %v1556_v55  ;;  %v1593_v55 = vadd.f32 %v7138_v41, %v7137_v60  ;;  %v7149_v60 = vld [vmem:[#allocation35_spill] sm:$0xff]  ;;  %v7150_v41 = vld [vmem:[#allocation77_spill] sm:$0xff] }
 0x291   : > { %v3006_v44 = vadd.f32 %v5069_v25, %v2332_v50  ;;  %v3188_v26 = vpack.c.bf16 %v3135_v22, %v3134_v0  ;;  %v3074_v40 = vadd.f32 %v6543_v23, %v3003_v2  ;;  %v3140_v4 = vmax.f32 %v3076_v8, 0.0  ;;  %v7132_v0 = vld [vmem:[#allocation69_spill] sm:$0xff]  ;;  %v6674_v22 = vpop.f32.mrf.mxu0  ;;  %v7133_v25 = vld [vmem:[#allocation107_spill] sm:$0xff] }
 0x292   : > { %v2823_v24 = vpop.f32.mrf.mxu1  ;;  %v2339_v12 = vadd.f32 %v7133_v25, %v1577_v14 }
 0x293   : > { %v3077_v51 = vadd.f32 %v6543_v23, %v3006_v44  ;;  %v3004_v36 = vadd.f32 %v2823_v24, %v2330_v30  ;;  %5142 = vmatprep.mubr.bf16.mxu0 %v3188_v26  ;;  %v3138_v7 = vmax.f32 %v3074_v40, 0.0  ;;  %v7134_v26 = vld [vmem:[#allocation109_spill] sm:$0xff] }
 0x294   : > { %v5072_v18 = vpop.f32.mrf.mxu1  ;;  %5143 = vmatmul.mubr.bf16.gmra.mxu0 %v3189_v58  ;;  %v1580_v58 = vadd.f32 %v7132_v0, %v7131_v31  ;;  %v2337_v24 = vadd.f32 %v7134_v26, %v1569_v62  ;;  %v2343_v62 = vadd.f32 %v6566_v3, %v1593_v55  ;;  %v1612_v55 = vadd.f32 %v7150_v41, %v7149_v60  ;;  %v7162_v60 = vld [vmem:[#allocation85_spill] sm:$0xff] }
 0x295   : > { %v3141_v33 = vmax.f32 %v3077_v51, 0.0  ;;  %v3075_v20 = vadd.f32 %v6543_v23, %v3004_v36  ;;  %v3009_v49 = vadd.f32 %v5072_v18, %v2335_v54  ;;  %v1572_v54 = vadd.f32 %v7136_v45, %v7135_v13  ;;  %v6686_v18 = vpop.f32.mrf.mxu0 }
 0x296   : > { %v2836_v38 = vpop.f32.mrf.mxu1 }
 0x297   : > { %v3191_v32 = vpack.c.bf16 %v3141_v33, %v3140_v4  ;;  %v3139_v56 = vmax.f32 %v3075_v20, 0.0  ;;  %v3007_v19 = vadd.f32 %v2836_v38, %v2333_v27  ;;  %v3080_v37 = vadd.f32 %v6543_v23, %v3009_v49  ;;  %v6694_v43 = vpop.f32.mrf.mxu0 }
 0x298   : > { %v5073_v34 = vpop.f32.mrf.mxu1  ;;  %v2340_v27 = vadd.f32 %v6549_v16, %v1580_v58  ;;  %v2338_v14 = vadd.f32 %v6562_v61, %v1572_v54  ;;  %v7147_v54 = vld [vmem:[#allocation34_spill] sm:$0xff] }
 0x299   : > { %v3010_v53 = vadd.f32 %v5073_v34, %v2336_v6  ;;  %v3190_v50 = vpack.c.bf16 %v3139_v56, %v3138_v7  ;;  %v3078_v30 = vadd.f32 %v6543_v23, %v3007_v19  ;;  %v3144_v51 = vmax.f32 %v3080_v37, 0.0  ;;  %v7140_v6 = vld [vmem:[#allocation72_spill] sm:$0xff]  ;;  %v7142_v56 = vld [vmem:[#allocation73_spill] sm:$0xff] }
 0x29a   : > { %v2839_v2 = vpop.f32.mrf.mxu1  ;;  %v1585_v21 = vadd.f32 %v7140_v6, %v7139_v9  ;;  %v7143_v37 = vld [vmem:[#allocation32_spill] sm:$0xff] }
 0x29b   : > { %v3081_v8 = vadd.f32 %v6543_v23, %v3010_v53  ;;  %v3008_v44 = vadd.f32 %v2839_v2, %v2334_v42  ;;  %5146 = vmatprep.mubr.bf16.mxu0 %v3190_v50  ;;  %v3142_v33 = vmax.f32 %v3078_v30, 0.0  ;;  %v7144_v53 = vld [vmem:[#allocation74_spill] sm:$0xff]  ;;  %v7146_v30 = vld [vmem:[#allocation75_spill] sm:$0xff]  ;;  %v7151_v6 = vld [vmem:[#allocation36_spill] sm:$0xff] }
 0x29c   : > { %v5076_v40 = vpop.f32.mrf.mxu1  ;;  %5147 = vmatmul.mubr.bf16.gmra.mxu0 %v3191_v32  ;;  %v7141_v32 = vld [vmem:[#allocation31_spill] sm:$0xff]  ;;  %v2341_v61 = vadd.f32 %v6579_v59, %v1585_v21  ;;  %v1588_v50 = vadd.f32 %v7144_v53, %v7143_v37  ;;  %v7152_v21 = vld [vmem:[#allocation78_spill] sm:$0xff]  ;;  %v7156_v53 = vld [vmem:[#allocation81_spill] sm:$0xff] }
 0x29d   : > { %v3145_v36 = vmax.f32 %v3081_v8, 0.0  ;;  %v3079_v17 = vadd.f32 %v6543_v23, %v3008_v44  ;;  %v3013_v57 = vadd.f32 %v5076_v40, %v2339_v12  ;;  %v1596_v19 = vadd.f32 %v7142_v56, %v7141_v32  ;;  %v7145_v12 = vld [vmem:[#allocation33_spill] sm:$0xff]  ;;  %v6706_v44 = vpop.f32.mrf.mxu0  ;;  %v7148_v40 = vld [vmem:[#allocation76_spill] sm:$0xff]  ;;  %v7155_v37 = vld [vmem:[#allocation38_spill] sm:$0xff] }
 0x29e   : > { %v2852_v4 = vpop.f32.mrf.mxu1  ;;  %v1609_v8 = vadd.f32 %v7146_v30, %v7145_v12  ;;  %v7153_v56 = vld [vmem:[#allocation37_spill] sm:$0xff] }
 0x29f   : > { %v3193_v20 = vpack.c.bf16 %v3145_v36, %v3144_v51  ;;  %v3143_v49 = vmax.f32 %v3079_v17, 0.0  ;;  %v3011_v63 = vadd.f32 %v2852_v4, %v2337_v24  ;;  %v3084_v38 = vadd.f32 %v6543_v23, %v3013_v57  ;;  %v6714_v4 = vpop.f32.mrf.mxu0 }
 0x2a0   : > { %v5077_v1 = vpop.f32.mrf.mxu1  ;;  %v2344_v3 = vadd.f32 %v6583_v35, %v1596_v19  ;;  %v1601_v51 = vadd.f32 %v7148_v40, %v7147_v54  ;;  %v2342_v17 = vadd.f32 %v6596_v48, %v1588_v50  ;;  %v7154_v19 = vld [vmem:[#allocation79_spill] sm:$0xff]  ;;  %v1617_v50 = vadd.f32 %v7156_v53, %v7155_v37  ;;  %v7160_v54 = vld [vmem:[#allocation84_spill] sm:$0xff] }
 0x2a1   : > { %v3014_v7 = vadd.f32 %v5077_v1, %v2340_v27  ;;  %v3192_v16 = vpack.c.bf16 %v3143_v49, %v3142_v33  ;;  %v3082_v34 = vadd.f32 %v6543_v23, %v3011_v63  ;;  %v3148_v0 = vmax.f32 %v3084_v38, 0.0 }
 0x2a2   : > { %v2855_v10 = vpop.f32.mrf.mxu1  ;;  %v2345_v48 = vadd.f32 %v6613_v15, %v1601_v51  ;;  %v1604_v1 = vadd.f32 %v7152_v21, %v7151_v6 }
 0x2a3   : > { %v3085_v28 = vadd.f32 %v6543_v23, %v3014_v7  ;;  %v3012_v42 = vadd.f32 %v2855_v10, %v2338_v14  ;;  %5150 = vmatprep.mubr.bf16.mxu0 %v3192_v16  ;;  %v3146_v24 = vmax.f32 %v3082_v34, 0.0  ;;  %v1625_v10 = vadd.f32 %v7154_v19, %v7153_v56 }
 0x2a4   : > { %v5080_v31 = vpop.f32.mrf.mxu1  ;;  %5151 = vmatmul.mubr.bf16.gmra.mxu0 %v3193_v20  ;;  %v2347_v20 = vadd.f32 %v6600_v5, %v1609_v8  ;;  %v2348_v5 = vadd.f32 %v6617_v46, %v1612_v55 }
 0x2a5   : > { %v3149_v58 = vmax.f32 %v3085_v28, 0.0  ;;  %v3083_v2 = vadd.f32 %v6543_v23, %v3012_v42  ;;  %v3017_v25 = vadd.f32 %v5080_v31, %v2343_v62  ;;  %v6726_v62 = vpop.f32.mrf.mxu0 }
 0x2a6   : > { %v2868_v26 = vpop.f32.mrf.mxu1 }
 0x2a7   : > { %v3195_v59 = vpack.c.bf16 %v3149_v58, %v3148_v0  ;;  %v3147_v13 = vmax.f32 %v3083_v2, 0.0  ;;  %v3015_v45 = vadd.f32 %v2868_v26, %v2341_v61  ;;  %v3088_v57 = vadd.f32 %v6543_v23, %v3017_v25  ;;  %v7157_v25 = vld [vmem:[#allocation39_spill] sm:$0xff]  ;;  %v6734_v30 = vpop.f32.mrf.mxu0 }
 0x2a8   : > { %v5081_v36 = vpop.f32.mrf.mxu1  ;;  %v2346_v0 = vadd.f32 %v6630_v29, %v1604_v1  ;;  %v2351_v26 = vadd.f32 %v6634_v47, %v1625_v10  ;;  %v2349_v29 = vadd.f32 %v6647_v52, %v1617_v50 }
 0x2a9   : > { %v3018_v27 = vadd.f32 %v5081_v36, %v2344_v3  ;;  %v3194_v35 = vpack.c.bf16 %v3147_v13, %v3146_v24  ;;  %v3086_v49 = vadd.f32 %v6543_v23, %v3015_v45  ;;  %v3152_v38 = vmax.f32 %v3088_v57, 0.0  ;;  %v7158_v3 = vld [vmem:[#allocation82_spill] sm:$0xff]  ;;  %v7159_v45 = vld [vmem:[#allocation40_spill] sm:$0xff]  ;;  %v6746_v55 = vpop.f32.mrf.mxu0 }
 0x2aa   : > { %v2871_v33 = vpop.f32.mrf.mxu1  ;;  %v1628_v12 = vadd.f32 %v7158_v3, %v7157_v25  ;;  %v1620_v40 = vadd.f32 %v7160_v54, %v7159_v45 }
 0x2ab   : > { %v3089_v63 = vadd.f32 %v6543_v23, %v3018_v27  ;;  %v3016_v9 = vadd.f32 %v2871_v33, %v2342_v17  ;;  %5154 = vmatprep.mubr.bf16.mxu0 %v3194_v35  ;;  %v3150_v28 = vmax.f32 %v3086_v49, 0.0  ;;  %v7161_v35 = vld [vmem:[#allocation41_spill] sm:$0xff] }
 0x2ac   : > { %v5084_v14 = vpop.f32.mrf.mxu1  ;;  %5155 = vmatmul.mubr.bf16.gmra.mxu0 %v3195_v59  ;;  %v2352_v47 = vadd.f32 %v6651_v39, %v1628_v12  ;;  %v1641_v41 = vadd.f32 %v7162_v60, %v7161_v35  ;;  %v2350_v1 = vadd.f32 %v6666_v11, %v1620_v40  ;;  %v7167_v11 = vld [vmem:[#allocation44_spill] sm:$0xff] }
 0x2ad   : > { %v3153_v7 = vmax.f32 %v3089_v63, 0.0  ;;  %v3087_v16 = vadd.f32 %v6543_v23, %v3016_v9  ;;  %v3021_v32 = vadd.f32 %v5084_v14, %v2347_v20  ;;  %v7163_v9 = vld [vmem:[#allocation42_spill] sm:$0xff] }
 0x2ae   : > { %v2884_v34 = vpop.f32.mrf.mxu1  ;;  %v2355_v19 = vadd.f32 %v6674_v22, %v1641_v41 }
 0x2af   : > { %v3197_v15 = vpack.c.bf16 %v3153_v7, %v3152_v38  ;;  %v3151_v42 = vmax.f32 %v3087_v16, 0.0  ;;  %v3019_v61 = vadd.f32 %v2884_v34, %v2345_v48  ;;  %v3092_v58 = vadd.f32 %v6543_v23, %v3021_v32  ;;  %v7164_v48 = vld [vmem:[#allocation87_spill] sm:$0xff]  ;;  %v7166_v16 = vld [vmem:[#allocation88_spill] sm:$0xff] }
 0x2b0   : > { %v5085_v31 = vpop.f32.mrf.mxu1  ;;  %v1633_v6 = vadd.f32 %v7164_v48, %v7163_v9  ;;  %v7165_v7 = vld [vmem:[#allocation43_spill] sm:$0xff] }
 0x2b1   : > { %v3022_v2 = vadd.f32 %v5085_v31, %v2348_v5  ;;  %v3196_v46 = vpack.c.bf16 %v3151_v42, %v3150_v28  ;;  %v3090_v24 = vadd.f32 %v6543_v23, %v3019_v61  ;;  %v3156_v36 = vmax.f32 %v3092_v58, 0.0  ;;  %v5020_v5 = vpop.f32.mrf.mxu0  ;;  %v7168_v42 = vld [vmem:[#allocation90_spill] sm:$0xff]  ;;  %v7169_v58 = vld [vmem:[#allocation45_spill] sm:$0xff] }
 0x2b2   : > { %v2887_v8 = vpop.f32.mrf.mxu1  ;;  %v1644_v32 = vadd.f32 %v7166_v16, %v7165_v7  ;;  %v1636_v61 = vadd.f32 %v7168_v42, %v7167_v11 }
 0x2b3   : > { %v3093_v59 = vadd.f32 %v6543_v23, %v3022_v2  ;;  %v3020_v13 = vadd.f32 %v2887_v8, %v2346_v0  ;;  %5158 = vmatprep.mubr.bf16.mxu0 %v3196_v46  ;;  %v3154_v20 = vmax.f32 %v3090_v24, 0.0  ;;  %v7170_v2 = vld [vmem:[#allocation91_spill] sm:$0xff]  ;;  %v2274_v25 = vpop.f32.mrf.mxu0  ;;  %v7171_v24 = vld [vmem:[#allocation46_spill] sm:$0xff] }
 0x2b4   : > { %v5088_v51 = vpop.f32.mrf.mxu1  ;;  %5159 = vmatmul.mubr.bf16.gmra.mxu0 %v3197_v15  ;;  %v2353_v15 = vadd.f32 %v6686_v18, %v1633_v6  ;;  %v2356_v22 = vadd.f32 %v6694_v43, %v1644_v32  ;;  %v1657_v46 = vadd.f32 %v7170_v2, %v7169_v58  ;;  %v2354_v45 = vadd.f32 %v6706_v44, %v1636_v61  ;;  %v7173_v43 = vld [vmem:[#allocation47_spill] sm:$0xff]  ;;  %v7175_v44 = vld [vmem:[#allocation48_spill] sm:$0xff] }
 0x2b5   : > { %v3157_v17 = vmax.f32 %v3093_v59, 0.0  ;;  %v3091_v57 = vadd.f32 %v6543_v23, %v3020_v13  ;;  %v3025_v27 = vadd.f32 %v5088_v51, %v2351_v26  ;;  %v7172_v59 = vld [vmem:[#allocation93_spill] sm:$0xff]  ;;  %v7182_v61 = vld [vmem:[#allocation100_spill] sm:$0xff] }
 0x2b6   : > { %v2900_v33 = vpop.f32.mrf.mxu1  ;;  %v1649_v13 = vadd.f32 %v7172_v59, %v7171_v24 }
 0x2b7   : > { %v3199_v52 = vpack.c.bf16 %v3157_v17, %v3156_v36  ;;  %v3155_v49 = vmax.f32 %v3091_v57, 0.0  ;;  %v3023_v63 = vadd.f32 %v2900_v33, %v2349_v29  ;;  %v3096_v14 = vadd.f32 %v6543_v23, %v3025_v27  ;;  %v7174_v36 = vld [vmem:[#allocation94_spill] sm:$0xff]  ;;  %v5021_v57 = vpop.f32.mrf.mxu0 }
 0x2b8   : > { %v5089_v21 = vpop.f32.mrf.mxu1  ;;  %v1660_v17 = vadd.f32 %v7174_v36, %v7173_v43  ;;  %v2357_v33 = vadd.f32 %v6726_v62, %v1649_v13  ;;  %v7185_v13 = vld [vmem:[#allocation54_spill] sm:$0xff]  ;;  %v7187_v36 = vld [vmem:[#allocation55_spill] sm:$0xff] }
 0x2b9   : > { %v3026_v38 = vadd.f32 %v5089_v21, %v2352_v47  ;;  %v3198_v39 = vpack.c.bf16 %v3155_v49, %v3154_v20  ;;  %v3094_v10 = vadd.f32 %v6543_v23, %v3023_v63  ;;  %v3160_v53 = vmax.f32 %v3096_v14, 0.0  ;;  %v7176_v20 = vld [vmem:[#allocation96_spill] sm:$0xff]  ;;  %v7177_v21 = vld [vmem:[#allocation49_spill] sm:$0xff] }
 0x2ba   : > { %v2903_v56 = vpop.f32.mrf.mxu1  ;;  %v2359_v47 = vadd.f32 %v6714_v4, %v1657_v46  ;;  %v2360_v4 = vadd.f32 %v6734_v30, %v1660_v17  ;;  %v7181_v30 = vld [vmem:[#allocation51_spill] sm:$0xff]  ;;  %v7183_v46 = vld [vmem:[#allocation52_spill] sm:$0xff]  ;;  %v7188_v17 = vld [vmem:[#allocation105_spill] sm:$0xff] }
 0x2bb   : > { %v3097_v34 = vadd.f32 %v6543_v23, %v3026_v38  ;;  %v3024_v28 = vadd.f32 %v2903_v56, %v2350_v1  ;;  %5162 = vmatprep.mubr.bf16.mxu0 %v3198_v39  ;;  %v3158_v12 = vmax.f32 %v3094_v10, 0.0  ;;  %v7178_v1 = vld [vmem:[#allocation97_spill] sm:$0xff]  ;;  %v2277_v38 = vpop.f32.mrf.mxu0  ;;  %v7179_v56 = vld [vmem:[#allocation50_spill] sm:$0xff] }
 0x2bc   : > { %v5092_v37 = vpop.f32.mrf.mxu1  ;;  %5163 = vmatmul.mubr.bf16.gmra.mxu0 %v3199_v52  ;;  %v1652_v52 = vadd.f32 %v7176_v20, %v7175_v44  ;;  %v1673_v14 = vadd.f32 %v7178_v1, %v7177_v21  ;;  %v7189_v44 = vld [vmem:[#allocation56_spill] sm:$0xff]  ;;  %v7191_v21 = vld [vmem:[#allocation57_spill] sm:$0xff] }
 0x2bd   : > { %v3161_v50 = vmax.f32 %v3097_v34, 0.0  ;;  %v3095_v31 = vadd.f32 %v6543_v23, %v3024_v28  ;;  %v3029_v0 = vadd.f32 %v5092_v37, %v2355_v19  ;;  %v7180_v19 = vld [vmem:[#allocation99_spill] sm:$0xff]  ;;  %v1676_v37 = vadd.f32 %v7182_v61, %v7181_v30  ;;  %v7192_v1 = vld [vmem:[#allocation108_spill] sm:$0xff] }
 0x2be   : > { %v2916_v3 = vpop.f32.mrf.mxu1  ;;  %v1665_v10 = vadd.f32 %v7180_v19, %v7179_v56  ;;  %v2358_v28 = vadd.f32 %v6746_v55, %v1652_v52 }
 0x2bf   : > { %v3201_v8 = vpack.c.bf16 %v3161_v50, %v3160_v53  ;;  %v3159_v18 = vmax.f32 %v3095_v31, 0.0  ;;  %v3027_v26 = vadd.f32 %v2916_v3, %v2353_v15  ;;  %v3100_v54 = vadd.f32 %v6543_v23, %v3029_v0  ;;  %v5024_v53 = vpop.f32.mrf.mxu0  ;;  %v7184_v3 = vld [vmem:[#allocation102_spill] sm:$0xff] }
 0x2c0   : > { %v5093_v29 = vpop.f32.mrf.mxu1  ;;  %v2363_v31 = vadd.f32 %v5020_v5, %v1673_v14  ;;  %v2361_v2 = vadd.f32 %v2274_v25, %v1665_v10  ;;  %v1668_v55 = vadd.f32 %v7184_v3, %v7183_v46  ;;  %v2364_v59 = vadd.f32 %v5021_v57, %v1676_v37  ;;  %v7186_v5 = vld [vmem:[#allocation103_spill] sm:$0xff]  ;;  %v7190_v57 = vld [vmem:[#allocation106_spill] sm:$0xff] }
 0x2c1   : > { %v3030_v40 = vadd.f32 %v5093_v29, %v2356_v22  ;;  %v3200_v51 = vpack.c.bf16 %v3159_v18, %v3158_v12  ;;  %v3098_v35 = vadd.f32 %v6543_v23, %v3027_v26  ;;  %v3164_v63 = vmax.f32 %v3100_v54, 0.0 }
 0x2c2   : > { %v2919_v27 = vpop.f32.mrf.mxu1  ;;  %v1689_v29 = vadd.f32 %v7186_v5, %v7185_v13  ;;  %v1692_v20 = vadd.f32 %v7190_v57, %v7189_v44  ;;  %v1684_v14 = vadd.f32 %v7192_v1, %v7191_v21 }
 0x2c3   : > { %v3101_v60 = vadd.f32 %v6543_v23, %v3030_v40  ;;  %v3028_v41 = vadd.f32 %v2919_v27, %v2354_v45  ;;  %5166 = vmatprep.mubr.bf16.mxu0 %v3200_v51  ;;  %v3162_v7 = vmax.f32 %v3098_v35, 0.0  ;;  %v2290_v45 = vpop.f32.mrf.mxu0  ;;  %v1681_v27 = vadd.f32 %v7188_v17, %v7187_v36 }
 0x2c4   : > { %v5096_v49 = vpop.f32.mrf.mxu1  ;;  %5167 = vmatmul.mubr.bf16.gmra.mxu0 %v3201_v8  ;;  %v2362_v35 = vadd.f32 %v2277_v38, %v1668_v55 }
 0x2c5   : > { %v3165_v9 = vmax.f32 %v3101_v60, 0.0  ;;  %v3099_v48 = vadd.f32 %v6543_v23, %v3028_v41  ;;  %v3033_v6 = vadd.f32 %v5096_v49, %v2359_v47  ;;  %v5025_v52 = vpop.f32.mrf.mxu0 }
 0x2c6   : > { %v2932_v39 = vpop.f32.mrf.mxu1 }
 0x2c7   : > { %v3203_v16 = vpack.c.bf16 %v3165_v9, %v3164_v63  ;;  %v3163_v62 = vmax.f32 %v3099_v48, 0.0  ;;  %v3031_v32 = vadd.f32 %v2932_v39, %v2357_v33  ;;  %v3104_v15 = vadd.f32 %v6543_v23, %v3033_v6  ;;  %v2293_v56 = vpop.f32.mrf.mxu0 }
 0x2c8   : > { %v5097_v34 = vpop.f32.mrf.mxu1  ;;  %v2367_v63 = vadd.f32 %v5024_v53, %v1689_v29 }
 0x2c9   : > { %v3034_v11 = vadd.f32 %v5097_v34, %v2360_v4  ;;  %v3202_v42 = vpack.c.bf16 %v3163_v62, %v3162_v7  ;;  %v3102_v0 = vadd.f32 %v6543_v23, %v3031_v32  ;;  %v3168_v8 = vmax.f32 %v3104_v15, 0.0 }
 0x2ca   : > { %v2935_v50 = vpop.f32.mrf.mxu1  ;;  %v2365_v4 = vadd.f32 %v2290_v45, %v1681_v27  ;;  %v2368_v32 = vadd.f32 %v5025_v52, %v1692_v20 }
 0x2cb   : > { %v3105_v22 = vadd.f32 %v6543_v23, %v3034_v11  ;;  %v3032_v58 = vadd.f32 %v2935_v50, %v2358_v28  ;;  %5170 = vmatprep.mubr.bf16.mxu0 %v3202_v42  ;;  %v3166_v40 = vmax.f32 %v3102_v0, 0.0  ;;  %v2366_v42 = vadd.f32 %v2293_v56, %v1684_v14 }
 0x2cc   : > { %v5100_v12 = vpop.f32.mrf.mxu1  ;;  %5171 = vmatmul.mubr.bf16.gmra.mxu0 %v3203_v16 }
 0x2cd   : > { %v3169_v18 = vmax.f32 %v3105_v22, 0.0  ;;  %v3103_v26 = vadd.f32 %v6543_v23, %v3032_v58  ;;  %v3037_v24 = vadd.f32 %v5100_v12, %v2363_v31 }
 0x2ce   : > { %v2948_v54 = vpop.f32.mrf.mxu1 }
 0x2cf   : > { %v3205_v51 = vpack.c.bf16 %v3169_v18, %v3168_v8  ;;  %v3167_v43 = vmax.f32 %v3103_v26, 0.0  ;;  %v3035_v25 = vadd.f32 %v2948_v54, %v2361_v2  ;;  %v3108_v60 = vadd.f32 %v6543_v23, %v3037_v24  ;;  %v6810_v18 = vld [vmem:[%s6967_s7] ss:$0 sm:$0xff] }
 0x2d0   : > { %v5101_v47 = vpop.f32.mrf.mxu1 }
 0x2d1   : > { %v3038_v41 = vadd.f32 %v5101_v47, %v2364_v59  ;;  %v3204_v33 = vpack.c.bf16 %v3167_v43, %v3166_v40  ;;  %v3106_v9 = vadd.f32 %v6543_v23, %v3035_v25  ;;  %v3172_v39 = vmax.f32 %v3108_v60, 0.0 }
 0x2d2   : > { %v2951_v49 = vpop.f32.mrf.mxu1 }
 0x2d3   : > { %v3109_v48 = vadd.f32 %v6543_v23, %v3038_v41  ;;  %v3036_v6 = vadd.f32 %v2951_v49, %v2362_v35  ;;  %5174 = vmatprep.mubr.bf16.mxu0 %v3204_v33  ;;  %v3170_v10 = vmax.f32 %v3106_v9, 0.0 }
 0x2d4   : > { %v5104_v38 = vpop.f32.mrf.mxu1  ;;  %5175 = vmatmul.mubr.bf16.gmra.mxu0 %v3205_v51 }
 0x2d5   : > { %v3173_v7 = vmax.f32 %v3109_v48, 0.0  ;;  %v3107_v16 = vadd.f32 %v6543_v23, %v3036_v6  ;;  %v3041_v62 = vadd.f32 %v5104_v38, %v2367_v63 }
 0x2d6   : > { %v2964_v19 = vpop.f32.mrf.mxu1 }
 0x2d7   : > { %v3207_v34 = vpack.c.bf16 %v3173_v7, %v3172_v39  ;;  %v3171_v28 = vmax.f32 %v3107_v16, 0.0  ;;  %v3039_v15 = vadd.f32 %v2964_v19, %v2365_v4  ;;  %v3112_v30 = vadd.f32 %v6543_v23, %v3041_v62 }
 0x2d8   : > { %v5105_v11 = vpop.f32.mrf.mxu1 }
 0x2d9   : > { %v3042_v61 = vadd.f32 %v5105_v11, %v2368_v32  ;;  %v3206_v37 = vpack.c.bf16 %v3171_v28, %v3170_v10  ;;  %v3110_v50 = vadd.f32 %v6543_v23, %v3039_v15  ;;  %v3176_v22 = vmax.f32 %v3112_v30, 0.0 }
 0x2da   : > { %v2967_v53 = vpop.f32.mrf.mxu1 }
 0x2db   : > { %v3113_v31 = vadd.f32 %v6543_v23, %v3042_v61  ;;  %v3040_v0 = vadd.f32 %v2967_v53, %v2366_v42  ;;  %5178 = vmatprep.mubr.bf16.mxu0 %v3206_v37  ;;  %v3174_v46 = vmax.f32 %v3110_v50, 0.0 }
 0x2dc   : > { %5179 = vmatmul.mubr.bf16.gmra.mxu0 %v3207_v34 }
 0x2dd   : > { %v3177_v58 = vmax.f32 %v3113_v31, 0.0  ;;  %v3111_v2 = vadd.f32 %v6543_v23, %v3040_v0 }
 0x2df   : > { %v3209_v3 = vpack.c.bf16 %v3177_v58, %v3176_v22  ;;  %v3175_v55 = vmax.f32 %v3111_v2, 0.0 }
 0x2e1   : > { %v3208_v12 = vpack.c.bf16 %v3175_v55, %v3174_v46 }
 0x2e3   : > { %5182 = vmatprep.mubr.bf16.mxu0 %v3208_v12 }
 0x2e4   : > { %5183 = vmatmul.mubr.bf16.gmra.mxu0 %v3209_v3 }
 0x32c   : > { %v5124_v8 = vpop.f32.mrf.mxu0 }
 0x32d   : > { %v3324_v59 = vadd.f32 %v5124_v8, %v6810_v18 }
 0x32e   : > { %v3315_v26 = vpop.f32.mrf.mxu0 }
 0x32f   : > { %v3316_v5 = vadd.f32 %v6810_v18, %v3315_v26 }
 0x330   : > { %v5125_v24 = vpop.f32.mrf.mxu0 }
 0x331   : > { %v3327_v13 = vadd.f32 %v5125_v24, %v6810_v18 }
 0x332   : > { %v3318_v23 = vpop.f32.mrf.mxu0 }
 0x333   : > { %v4403_v29 = vpack.c.bf16 %v3327_v13, %v3324_v59  ;;  %v3319_v45 = vadd.f32 %v6810_v18, %v3318_v23 }
 0x334   : > { %v5128_v54 = vpop.f32.mrf.mxu0 }
 0x335   : > { %4555 = vst [vmem:[%s6817_s17 + $0x8] sm:$0xff] %v4403_v29   ;;  %v4398_v40 = vpack.c.bf16 %v3319_v45, %v3316_v5  ;;  %v3340_v25 = vadd.f32 %v5128_v54, %v6810_v18 }
 0x336   : > { %v3331_v51 = vpop.f32.mrf.mxu0 }
 0x337   : > { %4399 = vst [vmem:[%s6817_s17] sm:$0xff] %v4398_v40   ;;  %v3332_v27 = vadd.f32 %v6810_v18, %v3331_v51 }
 0x338   : > { %v5129_v43 = vpop.f32.mrf.mxu0 }
 0x339   : > { %v3343_v36 = vadd.f32 %v5129_v43, %v6810_v18 }
 0x33a   : > { %v3334_v17 = vpop.f32.mrf.mxu0 }
 0x33b   : > { %v4413_v47 = vpack.c.bf16 %v3343_v36, %v3340_v25  ;;  %v3335_v35 = vadd.f32 %v6810_v18, %v3334_v17 }
 0x33c   : > { %v5132_v60 = vpop.f32.mrf.mxu0 }
 0x33d   : > { %4557 = vst [vmem:[%s6817_s17 + $0x18] sm:$0xff] %v4413_v47   ;;  %v4408_v41 = vpack.c.bf16 %v3335_v35, %v3332_v27  ;;  %v3356_v57 = vadd.f32 %v5132_v60, %v6810_v18 }
 0x33e   : > { %v3347_v33 = vpop.f32.mrf.mxu0 }
 0x33f   : > { %4556 = vst [vmem:[%s6817_s17 + $0x10] sm:$0xff] %v4408_v41   ;;  %v3348_v49 = vadd.f32 %v6810_v18, %v3347_v33 }
 0x340   : > { %v5133_v44 = vpop.f32.mrf.mxu0 }
 0x341   : > { %v3359_v20 = vadd.f32 %v5133_v44, %v6810_v18 }
 0x342   : > { %v3350_v52 = vpop.f32.mrf.mxu0 }
 0x343   : > { %v4423_v63 = vpack.c.bf16 %v3359_v20, %v3356_v57  ;;  %v3351_v9 = vadd.f32 %v6810_v18, %v3350_v52 }
 0x344   : > { %v5136_v48 = vpop.f32.mrf.mxu0 }
 0x345   : > { %4559 = vst [vmem:[%s6817_s17 + $0x28] sm:$0xff] %v4423_v63   ;;  %v4418_v6 = vpack.c.bf16 %v3351_v9, %v3348_v49  ;;  %v3372_v1 = vadd.f32 %v5136_v48, %v6810_v18 }
 0x346   : > { %v3363_v4 = vpop.f32.mrf.mxu0 }
 0x347   : > { %4558 = vst [vmem:[%s6817_s17 + $0x20] sm:$0xff] %v4418_v6   ;;  %v3364_v39 = vadd.f32 %v6810_v18, %v3363_v4 }
 0x348   : > { %v5137_v21 = vpop.f32.mrf.mxu0 }
 0x349   : > { %v3375_v14 = vadd.f32 %v5137_v21, %v6810_v18 }
 0x34a   : > { %v3366_v38 = vpop.f32.mrf.mxu0 }
 0x34b   : > { %v4433_v7 = vpack.c.bf16 %v3375_v14, %v3372_v1  ;;  %v3367_v16 = vadd.f32 %v6810_v18, %v3366_v38 }
 0x34c   : > { %v5140_v62 = vpop.f32.mrf.mxu0 }
 0x34d   : > { %4561 = vst [vmem:[%s6817_s17 + $0x38] sm:$0xff] %v4433_v7   ;;  %v4428_v32 = vpack.c.bf16 %v3367_v16, %v3364_v39  ;;  %v3388_v10 = vadd.f32 %v5140_v62, %v6810_v18 }
 0x34e   : > { %v3379_v56 = vpop.f32.mrf.mxu0 }
 0x34f   : > { %4560 = vst [vmem:[%s6817_s17 + $0x30] sm:$0xff] %v4428_v32   ;;  %v3380_v15 = vadd.f32 %v6810_v18, %v3379_v56 }
 0x350   : > { %v5141_v19 = vpop.f32.mrf.mxu0 }
 0x351   : > { %v3391_v34 = vadd.f32 %v5141_v19, %v6810_v18 }
 0x352   : > { %v3382_v28 = vpop.f32.mrf.mxu0 }
 0x353   : > { %v4443_v11 = vpack.c.bf16 %v3391_v34, %v3388_v10  ;;  %v3383_v42 = vadd.f32 %v6810_v18, %v3382_v28 }
 0x354   : > { %v5144_v30 = vpop.f32.mrf.mxu0 }
 0x355   : > { %4563 = vst [vmem:[%s6817_s17 + $0x48] sm:$0xff] %v4443_v11   ;;  %v4438_v61 = vpack.c.bf16 %v3383_v42, %v3380_v15  ;;  %v3404_v50 = vadd.f32 %v5144_v30, %v6810_v18 }
 0x356   : > { %v3395_v37 = vpop.f32.mrf.mxu0 }
 0x357   : > { %4562 = vst [vmem:[%s6817_s17 + $0x40] sm:$0xff] %v4438_v61   ;;  %v3396_v22 = vadd.f32 %v6810_v18, %v3395_v37 }
 0x358   : > { %v5145_v53 = vpop.f32.mrf.mxu0 }
 0x359   : > { %v3407_v31 = vadd.f32 %v5145_v53, %v6810_v18 }
 0x35a   : > { %v3398_v0 = vpop.f32.mrf.mxu0 }
 0x35b   : > { %v4453_v58 = vpack.c.bf16 %v3407_v31, %v3404_v50  ;;  %v3399_v2 = vadd.f32 %v6810_v18, %v3398_v0 }
 0x35c   : > { %v5148_v46 = vpop.f32.mrf.mxu0 }
 0x35d   : > { %4565 = vst [vmem:[%s6817_s17 + $0x58] sm:$0xff] %v4453_v58   ;;  %v4448_v3 = vpack.c.bf16 %v3399_v2, %v3396_v22  ;;  %v3420_v8 = vadd.f32 %v5148_v46, %v6810_v18 }
 0x35e   : > { %v3411_v55 = vpop.f32.mrf.mxu0 }
 0x35f   : > { %4564 = vst [vmem:[%s6817_s17 + $0x50] sm:$0xff] %v4448_v3   ;;  %v3412_v59 = vadd.f32 %v6810_v18, %v3411_v55 }
 0x360   : > { %v5149_v12 = vpop.f32.mrf.mxu0 }
 0x361   : > { %v3423_v26 = vadd.f32 %v5149_v12, %v6810_v18 }
 0x362   : > { %v3414_v24 = vpop.f32.mrf.mxu0 }
 0x363   : > { %v4463_v13 = vpack.c.bf16 %v3423_v26, %v3420_v8  ;;  %v3415_v23 = vadd.f32 %v6810_v18, %v3414_v24 }
 0x364   : > { %v5152_v5 = vpop.f32.mrf.mxu0 }
 0x365   : > { %4567 = vst [vmem:[%s6817_s17 + $0x68] sm:$0xff] %v4463_v13   ;;  %v4458_v29 = vpack.c.bf16 %v3415_v23, %v3412_v59  ;;  %v3436_v40 = vadd.f32 %v5152_v5, %v6810_v18 }
 0x366   : > { %v3427_v45 = vpop.f32.mrf.mxu0 }
 0x367   : > { %4566 = vst [vmem:[%s6817_s17 + $0x60] sm:$0xff] %v4458_v29   ;;  %v3428_v25 = vadd.f32 %v6810_v18, %v3427_v45 }
 0x368   : > { %v5153_v54 = vpop.f32.mrf.mxu0 }
 0x369   : > { %v3439_v51 = vadd.f32 %v5153_v54, %v6810_v18 }
 0x36a   : > { %v3430_v43 = vpop.f32.mrf.mxu0 }
 0x36b   : > { %v4473_v36 = vpack.c.bf16 %v3439_v51, %v3436_v40  ;;  %v3431_v17 = vadd.f32 %v6810_v18, %v3430_v43 }
 0x36c   : > { %v5156_v27 = vpop.f32.mrf.mxu0 }
 0x36d   : > { %4569 = vst [vmem:[%s6817_s17 + $0x78] sm:$0xff] %v4473_v36   ;;  %v4468_v47 = vpack.c.bf16 %v3431_v17, %v3428_v25  ;;  %v3452_v41 = vadd.f32 %v5156_v27, %v6810_v18 }
 0x36e   : > { %v3443_v35 = vpop.f32.mrf.mxu0 }
 0x36f   : > { %4568 = vst [vmem:[%s6817_s17 + $0x70] sm:$0xff] %v4468_v47   ;;  %v3444_v57 = vadd.f32 %v6810_v18, %v3443_v35 }
 0x370   : > { %v5157_v60 = vpop.f32.mrf.mxu0 }
 0x371   : > { %v3455_v33 = vadd.f32 %v5157_v60, %v6810_v18 }
 0x372   : > { %v3446_v44 = vpop.f32.mrf.mxu0 }
 0x373   : > { %v4483_v20 = vpack.c.bf16 %v3455_v33, %v3452_v41  ;;  %v3447_v52 = vadd.f32 %v6810_v18, %v3446_v44 }
 0x374   : > { %v5160_v49 = vpop.f32.mrf.mxu0 }
 0x375   : > { %4571 = vst [vmem:[%s6817_s17 + $0x88] sm:$0xff] %v4483_v20   ;;  %v4478_v63 = vpack.c.bf16 %v3447_v52, %v3444_v57  ;;  %v3468_v6 = vadd.f32 %v5160_v49, %v6810_v18 }
 0x376   : > { %v3459_v9 = vpop.f32.mrf.mxu0 }
 0x377   : > { %4570 = vst [vmem:[%s6817_s17 + $0x80] sm:$0xff] %v4478_v63   ;;  %v3460_v1 = vadd.f32 %v6810_v18, %v3459_v9 }
 0x378   : > { %v5161_v48 = vpop.f32.mrf.mxu0 }
 0x379   : > { %v3471_v4 = vadd.f32 %v5161_v48, %v6810_v18 }
 0x37a   : > { %v3462_v21 = vpop.f32.mrf.mxu0 }
 0x37b   : > { %v4493_v14 = vpack.c.bf16 %v3471_v4, %v3468_v6  ;;  %v3463_v38 = vadd.f32 %v6810_v18, %v3462_v21 }
 0x37c   : > { %v5164_v39 = vpop.f32.mrf.mxu0 }
 0x37d   : > { %4573 = vst [vmem:[%s6817_s17 + $0x98] sm:$0xff] %v4493_v14   ;;  %v4488_v7 = vpack.c.bf16 %v3463_v38, %v3460_v1  ;;  %v3484_v32 = vadd.f32 %v5164_v39, %v6810_v18 }
 0x37e   : > { %v3475_v16 = vpop.f32.mrf.mxu0 }
 0x37f   : > { %4572 = vst [vmem:[%s6817_s17 + $0x90] sm:$0xff] %v4488_v7   ;;  %v3476_v10 = vadd.f32 %v6810_v18, %v3475_v16 }
 0x380   : > { %v5165_v62 = vpop.f32.mrf.mxu0 }
 0x381   : > { %v3487_v56 = vadd.f32 %v5165_v62, %v6810_v18 }
 0x382   : > { %v3478_v19 = vpop.f32.mrf.mxu0 }
 0x383   : > { %v4503_v34 = vpack.c.bf16 %v3487_v56, %v3484_v32  ;;  %v3479_v28 = vadd.f32 %v6810_v18, %v3478_v19 }
 0x384   : > { %v5168_v15 = vpop.f32.mrf.mxu0 }
 0x385   : > { %4575 = vst [vmem:[%s6817_s17 + $0xa8] sm:$0xff] %v4503_v34   ;;  %v4498_v11 = vpack.c.bf16 %v3479_v28, %v3476_v10  ;;  %v3500_v61 = vadd.f32 %v5168_v15, %v6810_v18 }
 0x386   : > { %v3491_v42 = vpop.f32.mrf.mxu0 }
 0x387   : > { %4574 = vst [vmem:[%s6817_s17 + $0xa0] sm:$0xff] %v4498_v11   ;;  %v3492_v50 = vadd.f32 %v6810_v18, %v3491_v42 }
 0x388   : > { %v5169_v30 = vpop.f32.mrf.mxu0 }
 0x389   : > { %v3503_v37 = vadd.f32 %v5169_v30, %v6810_v18 }
 0x38a   : > { %v3494_v53 = vpop.f32.mrf.mxu0 }
 0x38b   : > { %v4513_v31 = vpack.c.bf16 %v3503_v37, %v3500_v61  ;;  %v3495_v0 = vadd.f32 %v6810_v18, %v3494_v53 }
 0x38c   : > { %v5172_v22 = vpop.f32.mrf.mxu0 }
 0x38d   : > { %4577 = vst [vmem:[%s6817_s17 + $0xb8] sm:$0xff] %v4513_v31   ;;  %v4508_v58 = vpack.c.bf16 %v3495_v0, %v3492_v50  ;;  %v3516_v3 = vadd.f32 %v5172_v22, %v6810_v18 }
 0x38e   : > { %v3507_v2 = vpop.f32.mrf.mxu0 }
 0x38f   : > { %4576 = vst [vmem:[%s6817_s17 + $0xb0] sm:$0xff] %v4508_v58   ;;  %v3508_v8 = vadd.f32 %v6810_v18, %v3507_v2 }
 0x390   : > { %v5173_v46 = vpop.f32.mrf.mxu0 }
 0x391   : > { %v3519_v55 = vadd.f32 %v5173_v46, %v6810_v18 }
 0x392   : > { %v3510_v12 = vpop.f32.mrf.mxu0 }
 0x393   : > { %v4523_v26 = vpack.c.bf16 %v3519_v55, %v3516_v3  ;;  %v3511_v24 = vadd.f32 %v6810_v18, %v3510_v12 }
 0x394   : > { %v5176_v59 = vpop.f32.mrf.mxu0 }
 0x395   : > { %4579 = vst [vmem:[%s6817_s17 + $0xc8] sm:$0xff] %v4523_v26   ;;  %v4518_v13 = vpack.c.bf16 %v3511_v24, %v3508_v8  ;;  %v3532_v29 = vadd.f32 %v5176_v59, %v6810_v18 }
 0x396   : > { %v3523_v23 = vpop.f32.mrf.mxu0 }
 0x397   : > { %4578 = vst [vmem:[%s6817_s17 + $0xc0] sm:$0xff] %v4518_v13   ;;  %v3524_v40 = vadd.f32 %v6810_v18, %v3523_v23 }
 0x398   : > { %v5177_v5 = vpop.f32.mrf.mxu0 }
 0x399   : > { %v3535_v45 = vadd.f32 %v5177_v5, %v6810_v18 }
 0x39a   : > { %v3526_v54 = vpop.f32.mrf.mxu0 }
 0x39b   : > { %v4533_v51 = vpack.c.bf16 %v3535_v45, %v3532_v29  ;;  %v3527_v43 = vadd.f32 %v6810_v18, %v3526_v54 }
 0x39c   : > { %v5180_v25 = vpop.f32.mrf.mxu0 }
 0x39d   : > { %4581 = vst [vmem:[%s6817_s17 + $0xd8] sm:$0xff] %v4533_v51   ;;  %v4528_v36 = vpack.c.bf16 %v3527_v43, %v3524_v40  ;;  %v3548_v47 = vadd.f32 %v5180_v25, %v6810_v18 }
 0x39e   : > { %v3539_v17 = vpop.f32.mrf.mxu0 }
 0x39f   : > { %4580 = vst [vmem:[%s6817_s17 + $0xd0] sm:$0xff] %v4528_v36   ;;  %v3540_v41 = vadd.f32 %v6810_v18, %v3539_v17 }
 0x3a0   : > { %v5181_v27 = vpop.f32.mrf.mxu0 }
 0x3a1   : > { %v3551_v35 = vadd.f32 %v5181_v27, %v6810_v18 }
 0x3a2   : > { %v3542_v60 = vpop.f32.mrf.mxu0 }
 0x3a3   : > { %v4543_v33 = vpack.c.bf16 %v3551_v35, %v3548_v47  ;;  %v3543_v44 = vadd.f32 %v6810_v18, %v3542_v60 }
 0x3a4   : > { %v5184_v57 = vpop.f32.mrf.mxu0 }
 0x3a5   : > { %4583 = vst [vmem:[%s6817_s17 + $0xe8] sm:$0xff] %v4543_v33   ;;  %v4538_v20 = vpack.c.bf16 %v3543_v44, %v3540_v41  ;;  %v3564_v63 = vadd.f32 %v5184_v57, %v6810_v18 }
 0x3a6   : > { %v3555_v52 = vpop.f32.mrf.mxu0 }
 0x3a7   : > { %4582 = vst [vmem:[%s6817_s17 + $0xe0] sm:$0xff] %v4538_v20   ;;  %v3556_v6 = vadd.f32 %v6810_v18, %v3555_v52 }
 0x3a8   : > { %v5185_v49 = vpop.f32.mrf.mxu0 }
 0x3a9   : > { %v3567_v9 = vadd.f32 %v5185_v49, %v6810_v18 }
 0x3aa   : > { %v3558_v48 = vpop.f32.mrf.mxu0 }
 0x3ab   : > { %v4553_v4 = vpack.c.bf16 %v3567_v9, %v3564_v63  ;;  %v3559_v21 = vadd.f32 %v6810_v18, %v3558_v48 }
 0x3ad   : > { %4585 = vst [vmem:[%s6817_s17 + $0xf8] sm:$0xff] %v4553_v4   ;;  %v4548_v1 = vpack.c.bf16 %v3559_v21, %v3556_v6 }
 0x3af   : > { %4584 = vst [vmem:[%s6817_s17 + $0xf0] sm:$0xff] %v4548_v1  }
 0x3b0   : > { %5633 = shalt.err (!%p5630_p13)
}
 0x3b1   : > { %s5634_s19 = scalar_lea.hbm %s6914_s14, 4096  ;;  %s5638_s13 = scalar_lea.hbm %s7194_s15, 16384 }
 0x3b2   : > { %p5635_p12 = scmp.ne.s32.totalorder %s6914_s14, %s5634_s19  ;;  %p5639_p3 = scmp.lt.s32.totalorder %s6914_s14, %s7194_s15 }
 0x3b3   : > { %p5640_p7 = scmp.lt.s32.totalorder %s5638_s13, %s5634_s19 }
 0x3b4   : > { %p5636_p2 = pnand %p5635_p12, %p7195_p10 }
 0x3b5   : > { %p5641_p8 = por %p5640_p7, %p5639_p3 }
 0x3b6   : > { %p5637_p4 = pneg %p5636_p2 }
 0x3b8   : > { %p5642_p9 = pnand %p5641_p8, %p5637_p4 }
 0x3ba   : > { %5645 = shalt.err (!%p5642_p9)
}
 0x3bb   : > { %s5711_s16 = smov 64   ;;  %s5712_s27 = smov 4  }
 0x3bc   : > { %5218 = dma.vmem_to_hbm [thread:$0]  (%p7195_p10), %s6916_s20, 4096, %s6914_s14, %s3891_s9, %s5711_s16, %s5711_s16, %s5712_s27  }
 0x3bd PF: > { %s7196_s1 = sld [smem:[#allocation20_spill]]  ;;  %p5249_p1 = scmp.ge.s32.totalorder %s5700_s30, 2 }
 0x3be   : > { %s7197_s11 = sld [smem:[#allocation24_spill]] }
 0x3c3   : > { %s3919_s17 = sand.u32 1, %s7196_s1  }
 0x3c4   : > { %p7198_p5 = scmp.ne.s32.totalorder %s7197_s11, 0  ;;  %s3920_s8 = scalar_lea.sflag [#allocation4], %s3919_s17 }
 0x3c6   : > { %p5241_p0 = pnand %p5249_p1, %p7198_p5 }
 0x3c8   : > { %p5242_p6 = pneg %p5241_p0 }
 0x3ca   : > { %5683 = dma.done.wait (%p5242_p6), %s3920_s8, 4096  }
 0x3cb   : > { %5685 = vsyncadd (%p5242_p6), %s3920_s8, 4294963200  ;;  %s7199_s30 = sld [smem:[#allocation21_spill]]  ;;  %s7201_s27 = smov %s5692_s28 }
 0x3cc   : > { %s7200_s23 = sld [smem:[#allocation22_spill]]  ;;  %s7202_s28 = smov %s5696_s29 }
 0x3d1   : > { %p28_p11 = scmp.ge.s32.totalorder %s7199_s30, 6  }
 0x3d2   : > { %s7203_s29 = smov %s7200_s23 }
 0x3d3   :  { %30 = sbr.rel (!%p28_p11) target bundleno = 16 (0x10), region = 145 }
 0x3d8   :  { %3925 = vsyncpa [#allocation3], 1 }
 0x3d9   :  { %3927 = vsyncpa [#allocation3 + $0x1], 1 }
 0x3da   :  { %3928 = vsyncpa [#allocation6], 1 }
 0x3db   :  { %3930 = vsyncpa [#allocation6 + $0x1], 1 }
 0x3dc   :  { %3931 = vsyncpa [#allocation9], 1 }
 0x3dd   :  { %3933 = vsyncpa [#allocation9 + $0x1], 1 }
 0x3de   :  { %3934 = vsyncpa [#allocation12], 1 }
 0x3df   :  { %3935 = vsyncpa [#allocation4], 1 }
 0x3e0   :  { %3937 = vsyncpa [#allocation4 + $0x1], 1 }

</bundles_post_ra>
